<compile_context>
chip_gen: v7x
topology: tpu7x:2x2x1
jax: 0.10.0
libtpu: 0.0.40
codegen_flags: <defaults>
</compile_context>

<pallas_src>
import functools

import jax
import jax.numpy as jnp
from jax import lax
from jax.experimental import pallas as pl
from jax.experimental.pallas import tpu as pltpu


# ------------------------------- helpers ------------------------------------ #

def _round_up(x, m):
    return (x + m - 1) // m * m


def _pad2(a, rows, cols):
    return jnp.pad(a, ((0, rows - a.shape[0]), (0, cols - a.shape[1])))


def _nbytes(shape, dtype):
    n = 1
    for d in shape:
        n *= int(d)
    return n * jnp.dtype(dtype).itemsize


# --------------------------- fused Pallas kernel ----------------------------- #

def fused_forward_kernel(embed_dim, n_pad, m_pad,
                         # scalar prefetch (SMEM)
                         ptr_ref, cnt_ref,
                         # tensor inputs (VMEM, resident across the grid axis)
                         x_ref, g_ref, bt_ref, a_ref,
                         w1_ref, b1_ref, w2_ref, b2_ref, w3_ref, b3_ref,
                         w4_ref, b4_ref, w5_ref, b5_ref,
                         pool_ref, wdect_ref, bdec_ref,
                         # outputs
                         enc_ref, z_ref, gemb_ref, logits_ref, adj_ref,
                         # scratch: z zero-padded with m_pad extra rows (f32)
                         zpad_ref):
    b = pl.program_id(0)

    # ---- encode once (grid step 0): layernorm + GCN + pool + node decoder ----
    @pl.when(b == 0)
    def _encode_once():
        x = x_ref[...].astype(jnp.float32)
        e_pad = x.shape[-1]
        inv_e = 1.0 / float(embed_dim)
        col = lax.broadcasted_iota(jnp.int32, (1, e_pad), 1)
        valid_col = col < embed_dim
        # two-pass variance over the true embed_dim columns (padded cols = 0)
        mean = jnp.sum(x, axis=-1, keepdims=True) * inv_e
        d = jnp.where(valid_col, x - mean, 0.0)
        var = jnp.sum(d * d, axis=-1, keepdims=True) * inv_e
        y = d * lax.rsqrt(var + 1e-5) * g_ref[...] + bt_ref[...]
        enc_ref[...] = y

        # 5-layer GCN stack: bf16 MXU operands, f32 accumulation
        a = a_ref[...]                                     # bf16 [n_pad, n_pad]
        layers = ((w1_ref, b1_ref), (w2_ref, b2_ref), (w3_ref, b3_ref),
                  (w4_ref, b4_ref), (w5_ref, b5_ref))
        h = y
        for i, (w_r, b_r) in enumerate(layers):
            hw = jnp.dot(h.astype(jnp.bfloat16), w_r[...],
                         preferred_element_type=jnp.float32)
            h = jnp.dot(a, hw.astype(jnp.bfloat16),
                        preferred_element_type=jnp.float32) + b_r[...]
            if i < len(layers) - 1:
                h = jnp.maximum(h, 0.0)
        z = h
        z_ref[...] = z

        # padded z scratch (extra m_pad zero rows so per-graph pl.ds slices
        # never read out of bounds)
        l_pad = z.shape[-1]
        zpad_ref[pl.ds(0, n_pad), :] = z
        zpad_ref[pl.ds(n_pad, m_pad), :] = jnp.zeros((m_pad, l_pad), jnp.float32)

        # global mean pool + node decoder: bf16 MXU operands, f32 accumulation
        zb = z.astype(jnp.bfloat16)
        gemb_ref[...] = jnp.dot(pool_ref[...], zb,
                                preferred_element_type=jnp.float32)
        logits_ref[...] = (jnp.dot(zb, wdect_ref[...],
                                   preferred_element_type=jnp.float32)
                           + bdec_ref[...])

    # ---- per-graph dense-batch slice + sigmoid(Z Z^T), streamed per step ----
    start = ptr_ref[b]
    count = cnt_ref[b]
    zd = zpad_ref[pl.ds(start, m_pad), :]                  # f32 [m_pad, l_pad]
    row = lax.broadcasted_iota(jnp.int32, (m_pad, 1), 0)
    zd = jnp.where(row < count, zd, 0.0).astype(jnp.bfloat16)
    # contract last dim of both operands: no in-kernel transpose materialization
    adj_logits = lax.dot_general(zd, zd, (((1,), (1,)), ((), ())),
                                 preferred_element_type=jnp.float32)
    # TODO(synk): for a training loss, emit logits and fuse sigmoid into BCE
    # (sigmoid kept here to preserve the module's forward semantics).
    adj_ref[0] = jax.nn.sigmoid(adj_logits)


# -------------------- one-time operand preprocessing ------------------------- #

def prepare_fused_operands(params, a_hat, pool_mat,
                           embed_dim, hidden_dim, latent_dim):
    """Pad / transpose / cast weights and graph structures once (hoisted out
    of the per-call forward)."""
    n = a_hat.shape[0]
    num_graphs = pool_mat.shape[0]
    n_pad = _round_up(n, 16)              # 16: bf16 sublane packing
    e_pad = _round_up(embed_dim, 128)
    h_pad = _round_up(hidden_dim, 128)
    l_pad = _round_up(latent_dim, 128)
    b_pad = _round_up(num_graphs, 8)

    g_p = _pad2(params["ln_gamma"].reshape(1, -1), 1, e_pad)
    bt_p = _pad2(params["ln_beta"].reshape(1, -1), 1, e_pad)
    a_p = _pad2(a_hat, n_pad, n_pad).astype(jnp.bfloat16)

    pad_in = [e_pad, h_pad, h_pad, h_pad, h_pad]
    pad_out = [h_pad, h_pad, h_pad, h_pad, l_pad]
    flat_gcn = []
    for (w, bias), pi, po in zip(params["gcn"], pad_in, pad_out):
        flat_gcn.append(_pad2(w, pi, po).astype(jnp.bfloat16))
        flat_gcn.append(_pad2(bias.reshape(1, -1), 1, po))

    pool_p = _pad2(pool_mat, b_pad, n_pad).astype(jnp.bfloat16)
    wdect_p = _pad2(params["w_dec"].T, l_pad, e_pad).astype(jnp.bfloat16)
    bdec_p = _pad2(params["b_dec"].reshape(1, -1), 1, e_pad)
    return (g_p, bt_p, a_p, tuple(flat_gcn), pool_p, wdect_p, bdec_p)


# ------------------------------ Pallas wrapper ------------------------------- #

def fused_forward(x, ptr, counts, prep, embed_dim, num_graphs, max_nodes):
    g_p, bt_p, a_p, gcn_flat, pool_p, wdect_p, bdec_p = prep
    n_pad = a_p.shape[0]
    e_pad = g_p.shape[1]
    l_pad = wdect_p.shape[0]
    b_pad = pool_p.shape[0]
    m_pad = _round_up(max_nodes, 128)

    x_p = _pad2(x, n_pad, e_pad)
    inputs = (x_p, g_p, bt_p, a_p, *gcn_flat, pool_p, wdect_p, bdec_p)

    out_shape = (
        jax.ShapeDtypeStruct((n_pad, e_pad), jnp.float32),              # bert enc
        jax.ShapeDtypeStruct((n_pad, l_pad), jnp.float32),              # z
        jax.ShapeDtypeStruct((b_pad, l_pad), jnp.float32),              # graph emb
        jax.ShapeDtypeStruct((n_pad, e_pad), jnp.float32),              # logits
        jax.ShapeDtypeStruct((num_graphs, m_pad, m_pad), jnp.float32),  # adj
    )

    # every tensor input is resident across the (single) grid axis
    in_specs = [pl.BlockSpec(t.shape, lambda b, p, c: (0, 0)) for t in inputs]
    out_specs = (
        pl.BlockSpec((n_pad, e_pad), lambda b, p, c: (0, 0)),
        pl.BlockSpec((n_pad, l_pad), lambda b, p, c: (0, 0)),
        pl.BlockSpec((b_pad, l_pad), lambda b, p, c: (0, 0)),
        pl.BlockSpec((n_pad, e_pad), lambda b, p, c: (0, 0)),
        pl.BlockSpec((1, m_pad, m_pad), lambda b, p, c: (b, 0, 0)),     # streamed
    )
    scratch_shapes = [pltpu.VMEM((n_pad + m_pad, l_pad), jnp.float32)]

    # ---- generation-aware VMEM limit: resident + streamed + intermediates ----
    resident = sum(_nbytes(t.shape, t.dtype) for t in inputs)
    resident += sum(_nbytes(s.shape, s.dtype) for s in out_shape[:4])
    resident += _nbytes((n_pad + m_pad, l_pad), jnp.float32)            # scratch
    streamed = _nbytes((1, m_pad, m_pad), jnp.float32)                  # adj block
    h_max = max(int(w.shape[1]) for w in gcn_flat[0::2])
    extra = (4 * _nbytes((n_pad, h_max), jnp.float32)       # GCN f32 temporaries
             + 3 * _nbytes((m_pad, m_pad), jnp.float32)     # adj logits / sigmoid
             + 2 * _nbytes((m_pad, l_pad), jnp.float32))    # zd temporaries
    needed = 2 * resident + 2 * streamed + extra + (8 << 20)
    try:
        cap = int(pltpu.get_tpu_info().vmem_capacity_bytes)
    except Exception:
        cap = 64 << 20                                       # safe on all gens
    hi = max(int(cap * 0.85), 16 << 20)
    vmem_limit = int(max(min(needed, hi), min(32 << 20, hi)))

    kernel = functools.partial(fused_forward_kernel, embed_dim, n_pad, m_pad)
    grid_spec = pltpu.PrefetchScalarGridSpec(
        num_scalar_prefetch=2,
        grid=(num_graphs,),
        in_specs=in_specs,
        out_specs=out_specs,
        scratch_shapes=scratch_shapes,
    )
    enc, z, gemb, logits, adj = pl.pallas_call(
        kernel,
        grid_spec=grid_spec,
        out_shape=out_shape,
        compiler_params=pltpu.CompilerParams(
            # "arbitrary": the GCN at b == 0 feeds a scratch reused by every
            # later graph step (resident-output / accumulator pattern).
            dimension_semantics=("arbitrary",),
            vmem_limit_bytes=vmem_limit),
    )(ptr, counts, *inputs)
    return enc, z, gemb, logits, adj


# ------------------------------ Model (glue) --------------------------------- #

def init_params(key, vocab, embed_dim, hidden_dim, latent_dim):
    ks = jax.random.split(key, 16)
    p = {}
    # mock BERT (see TODO at top)
    p["tok_table"] = jax.random.normal(ks[0], (vocab, embed_dim), jnp.float32) * 0.1
    p["w_pool"] = jax.random.normal(ks[1], (embed_dim, embed_dim), jnp.float32) * 0.1
    p["b_pool"] = jax.random.normal(ks[2], (embed_dim,), jnp.float32) * 0.1
    # LayerNorm(embed_dim)
    p["ln_gamma"] = jnp.ones((embed_dim,), jnp.float32) + \
        0.01 * jax.random.normal(ks[3], (embed_dim,), jnp.float32)
    p["ln_beta"] = 0.01 * jax.random.normal(ks[4], (embed_dim,), jnp.float32)
    # GCNConv weights: (in, out) + bias(out,)
    dims = [(embed_dim, hidden_dim), (hidden_dim, hidden_dim),
            (hidden_dim, hidden_dim), (hidden_dim, hidden_dim),
            (hidden_dim, latent_dim)]
    gcn = []
    for i, (din, dout) in enumerate(dims):
        w = jax.random.normal(ks[5 + 2 * i], (din, dout), jnp.float32) * (din ** -0.5)
        b = 0.01 * jax.random.normal(ks[6 + 2 * i], (dout,), jnp.float32)
        gcn.append((w, b))
    p["gcn"] = gcn
    # node_decoder: nn.Linear(latent_dim, embed_dim) -> weight [embed, latent]
    p["w_dec"] = jax.random.normal(ks[15], (embed_dim, latent_dim), jnp.float32) * (latent_dim ** -0.5)
    p["b_dec"] = jnp.zeros((embed_dim,), jnp.float32)
    return p


def build_graph_structures(edge_index, batch, num_nodes, num_graphs):
    src, dst = edge_index
    a = jnp.zeros((num_nodes, num_nodes), jnp.float32)
    a = a.at[dst, src].add(1.0)
    a = a + jnp.eye(num_nodes, dtype=jnp.float32)        # add self loops
    deg = jnp.sum(a, axis=1)
    d_inv_sqrt = jnp.where(deg > 0, lax.rsqrt(deg), 0.0)
    a_hat = d_inv_sqrt[:, None] * a * d_inv_sqrt[None, :]

    counts = jnp.bincount(batch, length=num_graphs).astype(jnp.int32)
    max_nodes = int(jnp.max(counts))                     # concrete here (not under jit)
    ptr = jnp.concatenate([jnp.zeros((1,), counts.dtype),
                           jnp.cumsum(counts)[:-1]]).astype(jnp.int32)
    pos = jnp.arange(num_nodes) - ptr[batch]             # position within own graph

    # pool_mat[b, n] = 1/count_b if node n belongs to graph b  (global_mean_pool)
    member = (jnp.arange(num_graphs)[:, None] == batch[None, :])
    safe_counts = jnp.maximum(counts, 1)                 # guard empty graphs
    pool_mat = member.astype(jnp.float32) / safe_counts[:, None].astype(jnp.float32)

    # scatter_mat is only used by the pure-JAX reference (the kernel slices z
    # directly via scalar-prefetched ptr/counts).
    scatter_mat = (member[:, None, :] &
                   (jnp.arange(max_nodes)[None, :, None] == pos[None, None, :])
                   ).astype(jnp.float32)

    mask = jnp.arange(max_nodes)[None, :] < counts[:, None]
    return a_hat, pool_mat, scatter_mat, mask, ptr, counts, max_nodes


def mock_bert_pooler(params, input_ids, attention_mask):
    # TODO(synk): stand-in for BertModel(...).pooler_output (pretrained BERT not
    # loadable / translatable here).
    tok = params["tok_table"][input_ids]                              # [N, S, E]
    m = attention_mask[..., None].astype(jnp.float32)
    pooled = jnp.sum(tok * m, axis=1) / jnp.maximum(jnp.sum(m, axis=1), 1.0)
    return jnp.tanh(pooled @ params["w_pool"] + params["b_pool"])     # [N, E]


def graph_bert_autoencoder_forward(params, input_ids, attention_mask,
                                   prep, ptr, counts, mask,
                                   embed_dim, latent_dim, num_graphs, max_nodes):
    # encode(): mock BERT pooler in glue, everything else in one fused kernel
    x = mock_bert_pooler(params, input_ids, attention_mask)
    enc_p, z_p, gemb_p, logits_p, adj_p = fused_forward(
        x, ptr, counts, prep, embed_dim, num_graphs, max_nodes)

    n = x.shape[0]
    bert_encoding = enc_p[:n, :embed_dim]
    z = z_p[:n, :latent_dim]
    graph_emb = gemb_p[:num_graphs, :latent_dim]
    node_logits = logits_p[:n, :embed_dim]
    pred_adj = adj_p[:, :max_nodes, :max_nodes]
    return z, graph_emb, pred_adj, mask, node_logits, bert_encoding


# ------------------------------ Pure-JAX reference --------------------------- #

def reference_forward(params, input_ids, attention_mask,
                      a_hat, pool_mat, scatter_mat, mask):
    # Mirrors the kernel's mixed-precision policy: bf16 MXU operands with f32
    # accumulation for GCN / pool / decoder / Z Z^T; everything else f32.
    x = mock_bert_pooler(params, input_ids, attention_mask)
    mu = jnp.mean(x, axis=-1, keepdims=True)
    var = jnp.mean((x - mu) ** 2, axis=-1, keepdims=True)
    x = (x - mu) * lax.rsqrt(var + 1e-5) * params["ln_gamma"] + params["ln_beta"]
    bert_encoding = x

    a16 = a_hat.astype(jnp.bfloat16)
    h = x
    for i, (w, b) in enumerate(params["gcn"]):
        hw = jnp.dot(h.astype(jnp.bfloat16), w.astype(jnp.bfloat16),
                     preferred_element_type=jnp.float32)
        h = jnp.dot(a16, hw.astype(jnp.bfloat16),
                    preferred_element_type=jnp.float32) + b
        if i < len(params["gcn"]) - 1:
            h = jnp.maximum(h, 0.0)
    z = h

    zb = z.astype(jnp.bfloat16)
    graph_emb = jnp.dot(pool_mat.astype(jnp.bfloat16), zb,
                        preferred_element_type=jnp.float32)
    node_logits = jnp.dot(zb, params["w_dec"].T.astype(jnp.bfloat16),
                          preferred_element_type=jnp.float32) + params["b_dec"]
    z_dense = jnp.einsum("bmn,nl->bml", scatter_mat, z).astype(jnp.bfloat16)
    pred_adj = jax.nn.sigmoid(
        jnp.einsum("bml,bkl->bmk", z_dense, z_dense,
                   preferred_element_type=jnp.float32))
    return z, graph_emb, pred_adj, mask, node_logits, bert_encoding


# ----------------------------------- main ------------------------------------ #

if __name__ == "__main__":
    key = jax.random.PRNGKey(0)

    # small synthetic graph batch: N=8 nodes, B=2 graphs, seq_len=8 tokens/node
    num_nodes, seq_len, vocab = 8, 8, 50
    embed_dim, hidden_dim, latent_dim = 32, 32, 16
    num_graphs = 2

    k_ids, k_mask, k_par = jax.random.split(key, 3)
    input_ids = jax.random.randint(k_ids, (num_nodes, seq_len), 0, vocab)
    attention_mask = (jax.random.uniform(k_mask, (num_nodes, seq_len)) > 0.2
                      ).astype(jnp.int32)
    attention_mask = attention_mask.at[:, 0].set(1)      # keep at least 1 token

    batch = jnp.array([0, 0, 0, 1, 1, 1, 1, 1], jnp.int32)
    # undirected edges (both directions), within each graph
    e = [(0, 1), (1, 2), (0, 2), (3, 4), (4, 5), (5, 6), (6, 7), (3, 7)]
    src = jnp.array([s for s, d in e] + [d for s, d in e], jnp.int32)
    dst = jnp.array([d for s, d in e] + [s for s, d in e], jnp.int32)
    edge_index = (src, dst)

    params = init_params(k_par, vocab, embed_dim, hidden_dim, latent_dim)
    (a_hat, pool_mat, scatter_mat, mask,
     ptr, counts, max_nodes) = build_graph_structures(
        edge_index, batch, num_nodes, num_graphs)

    # one-time (per-model) padding / transposition / bf16 casting of weights
    prep = prepare_fused_operands(params, a_hat, pool_mat,
                                  embed_dim, hidden_dim, latent_dim)

    fwd = jax.jit(functools.partial(graph_bert_autoencoder_forward,
                                    embed_dim=embed_dim,
                                    latent_dim=latent_dim,
                                    num_graphs=num_graphs,
                                    max_nodes=max_nodes))
    out = fwd(params, input_ids, attention_mask, prep, ptr, counts, mask)
    out = jax.block_until_ready(out)

    ref = reference_forward(params, input_ids, attention_mask,
                            a_hat, pool_mat, scatter_mat, mask)
    names = ["z", "graph_emb", "pred_adj", "mask", "node_logits", "bert_encoding"]
    for name, got, want in zip(names, out, ref):
        assert got.shape == want.shape, (name, got.shape, want.shape)
        if got.dtype == jnp.bool_:
            assert bool(jnp.all(got == want)), name
        else:
            assert bool(jnp.allclose(got, want, atol=1e-2, rtol=1e-2)), name

    print("KERNEL_OK")
</pallas_src>

<mosaic_0001>
module attributes {stable_mosaic.version = 11 : i64} {
  func.func @fused_forward_kernel(%arg0: i32, %arg1: memref<2xi32, #tpu.memory_space<smem>>, %arg2: memref<2xi32, #tpu.memory_space<smem>>, %arg3: memref<16x128xf32, #tpu.memory_space<vmem>>, %arg4: memref<1x128xf32, #tpu.memory_space<vmem>>, %arg5: memref<1x128xf32, #tpu.memory_space<vmem>>, %arg6: memref<16x16xbf16, #tpu.memory_space<vmem>>, %arg7: memref<128x128xbf16, #tpu.memory_space<vmem>>, %arg8: memref<1x128xf32, #tpu.memory_space<vmem>>, %arg9: memref<128x128xbf16, #tpu.memory_space<vmem>>, %arg10: memref<1x128xf32, #tpu.memory_space<vmem>>, %arg11: memref<128x128xbf16, #tpu.memory_space<vmem>>, %arg12: memref<1x128xf32, #tpu.memory_space<vmem>>, %arg13: memref<128x128xbf16, #tpu.memory_space<vmem>>, %arg14: memref<1x128xf32, #tpu.memory_space<vmem>>, %arg15: memref<128x128xbf16, #tpu.memory_space<vmem>>, %arg16: memref<1x128xf32, #tpu.memory_space<vmem>>, %arg17: memref<8x16xbf16, #tpu.memory_space<vmem>>, %arg18: memref<128x128xbf16, #tpu.memory_space<vmem>>, %arg19: memref<1x128xf32, #tpu.memory_space<vmem>>, %arg20: memref<16x128xf32, #tpu.memory_space<vmem>>, %arg21: memref<16x128xf32, #tpu.memory_space<vmem>>, %arg22: memref<8x128xf32, #tpu.memory_space<vmem>>, %arg23: memref<16x128xf32, #tpu.memory_space<vmem>>, %arg24: memref<1x128x128xf32, #tpu.memory_space<vmem>>, %arg25: memref<144x128xf32, #tpu.memory_space<vmem>>) attributes {dimension_semantics = [#tpu.dimension_semantics<arbitrary>], iteration_bounds = array<i64: 2>, scalar_prefetch = 2 : i64, scratch_operands = 1 : i64, tpu.core_type = #tpu.core_type<tc>, window_params = [{pipeline_mode = #tpu.pipeline_mode<synchronous>, transform_indices = @transform_0, window_bounds = array<i64: 16, 128>}, {pipeline_mode = #tpu.pipeline_mode<synchronous>, transform_indices = @transform_1, window_bounds = array<i64: 1, 128>}, {pipeline_mode = #tpu.pipeline_mode<synchronous>, transform_indices = @transform_2, window_bounds = array<i64: 1, 128>}, {pipeline_mode = #tpu.pipeline_mode<synchronous>, transform_indices = @transform_3, window_bounds = array<i64: 16, 16>}, {pipeline_mode = #tpu.pipeline_mode<synchronous>, transform_indices = @transform_4, window_bounds = array<i64: 128, 128>}, {pipeline_mode = #tpu.pipeline_mode<synchronous>, transform_indices = @transform_5, window_bounds = array<i64: 1, 128>}, {pipeline_mode = #tpu.pipeline_mode<synchronous>, transform_indices = @transform_6, window_bounds = array<i64: 128, 128>}, {pipeline_mode = #tpu.pipeline_mode<synchronous>, transform_indices = @transform_7, window_bounds = array<i64: 1, 128>}, {pipeline_mode = #tpu.pipeline_mode<synchronous>, transform_indices = @transform_8, window_bounds = array<i64: 128, 128>}, {pipeline_mode = #tpu.pipeline_mode<synchronous>, transform_indices = @transform_9, window_bounds = array<i64: 1, 128>}, {pipeline_mode = #tpu.pipeline_mode<synchronous>, transform_indices = @transform_10, window_bounds = array<i64: 128, 128>}, {pipeline_mode = #tpu.pipeline_mode<synchronous>, transform_indices = @transform_11, window_bounds = array<i64: 1, 128>}, {pipeline_mode = #tpu.pipeline_mode<synchronous>, transform_indices = @transform_12, window_bounds = array<i64: 128, 128>}, {pipeline_mode = #tpu.pipeline_mode<synchronous>, transform_indices = @transform_13, window_bounds = array<i64: 1, 128>}, {pipeline_mode = #tpu.pipeline_mode<synchronous>, transform_indices = @transform_14, window_bounds = array<i64: 8, 16>}, {pipeline_mode = #tpu.pipeline_mode<synchronous>, transform_indices = @transform_15, window_bounds = array<i64: 128, 128>}, {pipeline_mode = #tpu.pipeline_mode<synchronous>, transform_indices = @transform_16, window_bounds = array<i64: 1, 128>}, {pipeline_mode = #tpu.pipeline_mode<synchronous>, transform_indices = @transform_17, window_bounds = array<i64: 16, 128>}, {pipeline_mode = #tpu.pipeline_mode<synchronous>, transform_indices = @transform_18, window_bounds = array<i64: 16, 128>}, {pipeline_mode = #tpu.pipeline_mode<synchronous>, transform_indices = @transform_19, window_bounds = array<i64: 8, 128>}, {pipeline_mode = #tpu.pipeline_mode<synchronous>, transform_indices = @transform_20, window_bounds = array<i64: 16, 128>}, {transform_indices = @transform_21, window_bounds = array<i64: 1, 128, 128>}]} {
    %c0_i32 = arith.constant 0 : i32
    %0 = arith.cmpi eq, %arg0, %c0_i32 : i32
    %1 = arith.extui %0 : i1 to i32
    %c0_i32_0 = arith.constant 0 : i32
    %2 = arith.cmpi ne, %1, %c0_i32_0 : i32
    scf.if %2 {
      %c0_6 = arith.constant 0 : index
      %c0_7 = arith.constant 0 : index
      %26 = vector.load %arg3[%c0_6, %c0_7] : memref<16x128xf32, #tpu.memory_space<vmem>>, vector<16x128xf32>
      %27 = tpu.iota {dimensions = array<i32: 1>} : vector<1x128xi32>
      %c32_i32 = arith.constant 32 : i32
      %28 = vector.broadcast %c32_i32 : i32 to vector<1x128xi32>
      %29 = arith.cmpi slt, %27, %28 : vector<1x128xi32>
      %cst_8 = arith.constant dense<0.000000e+00> : vector<16xf32>
      %30 = vector.multi_reduction <add>, %26, %cst_8 [1] : vector<16x128xf32> to vector<16xf32>
      %31 = vector.shape_cast %30 : vector<16xf32> to vector<16x1xf32>
      %cst_9 = arith.constant 3.125000e-02 : f32
      %32 = vector.broadcast %cst_9 : f32 to vector<16x1xf32>
      %33 = arith.mulf %31, %32 : vector<16x1xf32>
      %34 = vector.broadcast %33 : vector<16x1xf32> to vector<16x128xf32>
      %35 = arith.subf %26, %34 : vector<16x128xf32>
      %cst_10 = arith.constant 0.000000e+00 : f32
      %36 = vector.shape_cast %29 : vector<1x128xi1> to vector<1x128xi1>
      %37 = vector.broadcast %36 : vector<1x128xi1> to vector<16x128xi1>
      %38 = vector.broadcast %cst_10 : f32 to vector<16x128xf32>
      %39 = arith.select %37, %35, %38 : vector<16x128xi1>, vector<16x128xf32>
      %40 = arith.mulf %39, %39 : vector<16x128xf32>
      %cst_11 = arith.constant dense<0.000000e+00> : vector<16xf32>
      %41 = vector.multi_reduction <add>, %40, %cst_11 [1] : vector<16x128xf32> to vector<16xf32>
      %42 = vector.shape_cast %41 : vector<16xf32> to vector<16x1xf32>
      %cst_12 = arith.constant 3.125000e-02 : f32
      %43 = vector.broadcast %cst_12 : f32 to vector<16x1xf32>
      %44 = arith.mulf %42, %43 : vector<16x1xf32>
      %cst_13 = arith.constant 9.99999974E-6 : f32
      %45 = vector.broadcast %cst_13 : f32 to vector<16x1xf32>
      %46 = arith.addf %44, %45 : vector<16x1xf32>
      %47 = math.rsqrt %46 : vector<16x1xf32>
      %48 = vector.broadcast %47 : vector<16x1xf32> to vector<16x128xf32>
      %49 = arith.mulf %39, %48 : vector<16x128xf32>
      %c0_14 = arith.constant 0 : index
      %c0_15 = arith.constant 0 : index
      %50 = vector.load %arg4[%c0_14, %c0_15] : memref<1x128xf32, #tpu.memory_space<vmem>>, vector<1x128xf32>
      %51 = vector.broadcast %50 : vector<1x128xf32> to vector<16x128xf32>
      %52 = arith.mulf %49, %51 : vector<16x128xf32>
      %c0_16 = arith.constant 0 : index
      %c0_17 = arith.constant 0 : index
      %53 = vector.load %arg5[%c0_16, %c0_17] : memref<1x128xf32, #tpu.memory_space<vmem>>, vector<1x128xf32>
      %54 = vector.broadcast %53 : vector<1x128xf32> to vector<16x128xf32>
      %55 = arith.addf %52, %54 : vector<16x128xf32>
      %c0_18 = arith.constant 0 : index
      %c0_19 = arith.constant 0 : index
      %56 = vector.load %arg20[%c0_18, %c0_19] : memref<16x128xf32, #tpu.memory_space<vmem>>, vector<16x128xf32>
      tpu.vector_store %arg20[%c0_18, %c0_19], %55 {strides = array<i32>} : memref<16x128xf32, #tpu.memory_space<vmem>>, vector<16x128xf32>,
      %c0_20 = arith.constant 0 : index
      %c0_21 = arith.constant 0 : index
      %57 = vector.load %arg6[%c0_20, %c0_21] : memref<16x16xbf16, #tpu.memory_space<vmem>>, vector<16x16xbf16>
      %58 = arith.truncf %55 : vector<16x128xf32> to vector<16x128xbf16>
      %c0_22 = arith.constant 0 : index
      %c0_23 = arith.constant 0 : index
      %59 = vector.load %arg7[%c0_22, %c0_23] : memref<128x128xbf16, #tpu.memory_space<vmem>>, vector<128x128xbf16>
      %cst_24 = arith.constant dense<0.000000e+00> : vector<16x128xf32>
      %60 = tpu.matmul %58, %59, %cst_24 {dimension_numbers = #tpu.dot_dimension_numbers<[1], [0], [0], [1], [0, 0, 1, 1], [], []>} : vector<16x128xbf16>, vector<128x128xbf16>, vector<16x128xf32> -> vector<16x128xf32>
      %61 = arith.truncf %60 : vector<16x128xf32> to vector<16x128xbf16>
      %cst_25 = arith.constant dense<0.000000e+00> : vector<16x128xf32>
      %62 = tpu.matmul %57, %61, %cst_25 {dimension_numbers = #tpu.dot_dimension_numbers<[1], [0], [0], [1], [0, 0, 1, 1], [], []>} : vector<16x16xbf16>, vector<16x128xbf16>, vector<16x128xf32> -> vector<16x128xf32>
      %c0_26 = arith.constant 0 : index
      %c0_27 = arith.constant 0 : index
      %63 = vector.load %arg8[%c0_26, %c0_27] : memref<1x128xf32, #tpu.memory_space<vmem>>, vector<1x128xf32>
      %64 = vector.broadcast %63 : vector<1x128xf32> to vector<16x128xf32>
      %65 = arith.addf %62, %64 : vector<16x128xf32>
      %cst_28 = arith.constant 0.000000e+00 : f32
      %66 = vector.broadcast %cst_28 : f32 to vector<16x128xf32>
      %67 = arith.maximumf %65, %66 : vector<16x128xf32>
      %68 = arith.truncf %67 : vector<16x128xf32> to vector<16x128xbf16>
      %c0_29 = arith.constant 0 : index
      %c0_30 = arith.constant 0 : index
      %69 = vector.load %arg9[%c0_29, %c0_30] : memref<128x128xbf16, #tpu.memory_space<vmem>>, vector<128x128xbf16>
      %cst_31 = arith.constant dense<0.000000e+00> : vector<16x128xf32>
      %70 = tpu.matmul %68, %69, %cst_31 {dimension_numbers = #tpu.dot_dimension_numbers<[1], [0], [0], [1], [0, 0, 1, 1], [], []>} : vector<16x128xbf16>, vector<128x128xbf16>, vector<16x128xf32> -> vector<16x128xf32>
      %71 = arith.truncf %70 : vector<16x128xf32> to vector<16x128xbf16>
      %cst_32 = arith.constant dense<0.000000e+00> : vector<16x128xf32>
      %72 = tpu.matmul %57, %71, %cst_32 {dimension_numbers = #tpu.dot_dimension_numbers<[1], [0], [0], [1], [0, 0, 1, 1], [], []>} : vector<16x16xbf16>, vector<16x128xbf16>, vector<16x128xf32> -> vector<16x128xf32>
      %c0_33 = arith.constant 0 : index
      %c0_34 = arith.constant 0 : index
      %73 = vector.load %arg10[%c0_33, %c0_34] : memref<1x128xf32, #tpu.memory_space<vmem>>, vector<1x128xf32>
      %74 = vector.broadcast %73 : vector<1x128xf32> to vector<16x128xf32>
      %75 = arith.addf %72, %74 : vector<16x128xf32>
      %cst_35 = arith.constant 0.000000e+00 : f32
      %76 = vector.broadcast %cst_35 : f32 to vector<16x128xf32>
      %77 = arith.maximumf %75, %76 : vector<16x128xf32>
      %78 = arith.truncf %77 : vector<16x128xf32> to vector<16x128xbf16>
      %c0_36 = arith.constant 0 : index
      %c0_37 = arith.constant 0 : index
      %79 = vector.load %arg11[%c0_36, %c0_37] : memref<128x128xbf16, #tpu.memory_space<vmem>>, vector<128x128xbf16>
      %cst_38 = arith.constant dense<0.000000e+00> : vector<16x128xf32>
      %80 = tpu.matmul %78, %79, %cst_38 {dimension_numbers = #tpu.dot_dimension_numbers<[1], [0], [0], [1], [0, 0, 1, 1], [], []>} : vector<16x128xbf16>, vector<128x128xbf16>, vector<16x128xf32> -> vector<16x128xf32>
      %81 = arith.truncf %80 : vector<16x128xf32> to vector<16x128xbf16>
      %cst_39 = arith.constant dense<0.000000e+00> : vector<16x128xf32>
      %82 = tpu.matmul %57, %81, %cst_39 {dimension_numbers = #tpu.dot_dimension_numbers<[1], [0], [0], [1], [0, 0, 1, 1], [], []>} : vector<16x16xbf16>, vector<16x128xbf16>, vector<16x128xf32> -> vector<16x128xf32>
      %c0_40 = arith.constant 0 : index
      %c0_41 = arith.constant 0 : index
      %83 = vector.load %arg12[%c0_40, %c0_41] : memref<1x128xf32, #tpu.memory_space<vmem>>, vector<1x128xf32>
      %84 = vector.broadcast %83 : vector<1x128xf32> to vector<16x128xf32>
      %85 = arith.addf %82, %84 : vector<16x128xf32>
      %cst_42 = arith.constant 0.000000e+00 : f32
      %86 = vector.broadcast %cst_42 : f32 to vector<16x128xf32>
      %87 = arith.maximumf %85, %86 : vector<16x128xf32>
      %88 = arith.truncf %87 : vector<16x128xf32> to vector<16x128xbf16>
      %c0_43 = arith.constant 0 : index
      %c0_44 = arith.constant 0 : index
      %89 = vector.load %arg13[%c0_43, %c0_44] : memref<128x128xbf16, #tpu.memory_space<vmem>>, vector<128x128xbf16>
      %cst_45 = arith.constant dense<0.000000e+00> : vector<16x128xf32>
      %90 = tpu.matmul %88, %89, %cst_45 {dimension_numbers = #tpu.dot_dimension_numbers<[1], [0], [0], [1], [0, 0, 1, 1], [], []>} : vector<16x128xbf16>, vector<128x128xbf16>, vector<16x128xf32> -> vector<16x128xf32>
      %91 = arith.truncf %90 : vector<16x128xf32> to vector<16x128xbf16>
      %cst_46 = arith.constant dense<0.000000e+00> : vector<16x128xf32>
      %92 = tpu.matmul %57, %91, %cst_46 {dimension_numbers = #tpu.dot_dimension_numbers<[1], [0], [0], [1], [0, 0, 1, 1], [], []>} : vector<16x16xbf16>, vector<16x128xbf16>, vector<16x128xf32> -> vector<16x128xf32>
      %c0_47 = arith.constant 0 : index
      %c0_48 = arith.constant 0 : index
      %93 = vector.load %arg14[%c0_47, %c0_48] : memref<1x128xf32, #tpu.memory_space<vmem>>, vector<1x128xf32>
      %94 = vector.broadcast %93 : vector<1x128xf32> to vector<16x128xf32>
      %95 = arith.addf %92, %94 : vector<16x128xf32>
      %cst_49 = arith.constant 0.000000e+00 : f32
      %96 = vector.broadcast %cst_49 : f32 to vector<16x128xf32>
      %97 = arith.maximumf %95, %96 : vector<16x128xf32>
      %98 = arith.truncf %97 : vector<16x128xf32> to vector<16x128xbf16>
      %c0_50 = arith.constant 0 : index
      %c0_51 = arith.constant 0 : index
      %99 = vector.load %arg15[%c0_50, %c0_51] : memref<128x128xbf16, #tpu.memory_space<vmem>>, vector<128x128xbf16>
      %cst_52 = arith.constant dense<0.000000e+00> : vector<16x128xf32>
      %100 = tpu.matmul %98, %99, %cst_52 {dimension_numbers = #tpu.dot_dimension_numbers<[1], [0], [0], [1], [0, 0, 1, 1], [], []>} : vector<16x128xbf16>, vector<128x128xbf16>, vector<16x128xf32> -> vector<16x128xf32>
      %101 = arith.truncf %100 : vector<16x128xf32> to vector<16x128xbf16>
      %cst_53 = arith.constant dense<0.000000e+00> : vector<16x128xf32>
      %102 = tpu.matmul %57, %101, %cst_53 {dimension_numbers = #tpu.dot_dimension_numbers<[1], [0], [0], [1], [0, 0, 1, 1], [], []>} : vector<16x16xbf16>, vector<16x128xbf16>, vector<16x128xf32> -> vector<16x128xf32>
      %c0_54 = arith.constant 0 : index
      %c0_55 = arith.constant 0 : index
      %103 = vector.load %arg16[%c0_54, %c0_55] : memref<1x128xf32, #tpu.memory_space<vmem>>, vector<1x128xf32>
      %104 = vector.broadcast %103 : vector<1x128xf32> to vector<16x128xf32>
      %105 = arith.addf %102, %104 : vector<16x128xf32>
      %c0_56 = arith.constant 0 : index
      %c0_57 = arith.constant 0 : index
      %106 = vector.load %arg21[%c0_56, %c0_57] : memref<16x128xf32, #tpu.memory_space<vmem>>, vector<16x128xf32>
      tpu.vector_store %arg21[%c0_56, %c0_57], %105 {strides = array<i32>} : memref<16x128xf32, #tpu.memory_space<vmem>>, vector<16x128xf32>,
      %c0_58 = arith.constant 0 : index
      %c0_59 = arith.constant 0 : index
      %107 = vector.load %arg25[%c0_58, %c0_59] : memref<144x128xf32, #tpu.memory_space<vmem>>, vector<16x128xf32>
      tpu.vector_store %arg25[%c0_58, %c0_59], %105 {strides = array<i32>} : memref<144x128xf32, #tpu.memory_space<vmem>>, vector<16x128xf32>,
      %cst_60 = arith.constant 0.000000e+00 : f32
      %108 = vector.broadcast %cst_60 : f32 to vector<128x128xf32>
      %c16 = arith.constant 16 : index
      %c0_61 = arith.constant 0 : index
      %109 = vector.load %arg25[%c16, %c0_61] : memref<144x128xf32, #tpu.memory_space<vmem>>, vector<128x128xf32>
      tpu.vector_store %arg25[%c16, %c0_61], %108 {strides = array<i32>} : memref<144x128xf32, #tpu.memory_space<vmem>>, vector<128x128xf32>,
      %110 = arith.truncf %105 : vector<16x128xf32> to vector<16x128xbf16>
      %c0_62 = arith.constant 0 : index
      %c0_63 = arith.constant 0 : index
      %111 = vector.load %arg17[%c0_62, %c0_63] : memref<8x16xbf16, #tpu.memory_space<vmem>>, vector<8x16xbf16>
      %cst_64 = arith.constant dense<0.000000e+00> : vector<8x128xf32>
      %112 = tpu.matmul %111, %110, %cst_64 {dimension_numbers = #tpu.dot_dimension_numbers<[1], [0], [0], [1], [0, 0, 1, 1], [], []>} : vector<8x16xbf16>, vector<16x128xbf16>, vector<8x128xf32> -> vector<8x128xf32>
      %c0_65 = arith.constant 0 : index
      %c0_66 = arith.constant 0 : index
      %113 = vector.load %arg22[%c0_65, %c0_66] : memref<8x128xf32, #tpu.memory_space<vmem>>, vector<8x128xf32>
      tpu.vector_store %arg22[%c0_65, %c0_66], %112 {strides = array<i32>} : memref<8x128xf32, #tpu.memory_space<vmem>>, vector<8x128xf32>,
      %c0_67 = arith.constant 0 : index
      %c0_68 = arith.constant 0 : index
      %114 = vector.load %arg18[%c0_67, %c0_68] : memref<128x128xbf16, #tpu.memory_space<vmem>>, vector<128x128xbf16>
      %cst_69 = arith.constant dense<0.000000e+00> : vector<16x128xf32>
      %115 = tpu.matmul %110, %114, %cst_69 {dimension_numbers = #tpu.dot_dimension_numbers<[1], [0], [0], [1], [0, 0, 1, 1], [], []>} : vector<16x128xbf16>, vector<128x128xbf16>, vector<16x128xf32> -> vector<16x128xf32>
      %c0_70 = arith.constant 0 : index
      %c0_71 = arith.constant 0 : index
      %116 = vector.load %arg19[%c0_70, %c0_71] : memref<1x128xf32, #tpu.memory_space<vmem>>, vector<1x128xf32>
      %117 = vector.broadcast %116 : vector<1x128xf32> to vector<16x128xf32>
      %118 = arith.addf %115, %117 : vector<16x128xf32>
      %c0_72 = arith.constant 0 : index
      %c0_73 = arith.constant 0 : index
      %119 = vector.load %arg23[%c0_72, %c0_73] : memref<16x128xf32, #tpu.memory_space<vmem>>, vector<16x128xf32>
      tpu.vector_store %arg23[%c0_72, %c0_73], %118 {strides = array<i32>} : memref<16x128xf32, #tpu.memory_space<vmem>>, vector<16x128xf32>,
    } else {
    }
    %3 = arith.index_cast %arg0 : i32 to index
    %4 = memref.load %arg1[%3] : memref<2xi32, #tpu.memory_space<smem>>
    %5 = arith.index_cast %arg0 : i32 to index
    %6 = memref.load %arg2[%5] : memref<2xi32, #tpu.memory_space<smem>>
    %7 = arith.index_cast %4 : i32 to index
    %c0 = arith.constant 0 : index
    %8 = vector.load %arg25[%7, %c0] : memref<144x128xf32, #tpu.memory_space<vmem>>, vector<128x128xf32>
    %9 = tpu.iota {dimensions = array<i32: 0>} : vector<128x1xi32>
    %10 = vector.broadcast %6 : i32 to vector<128x1xi32>
    %11 = arith.cmpi slt, %9, %10 : vector<128x1xi32>
    %cst = arith.constant 0.000000e+00 : f32
    %12 = vector.shape_cast %11 : vector<128x1xi1> to vector<128x1xi1>
    %13 = vector.broadcast %12 : vector<128x1xi1> to vector<128x128xi1>
    %14 = vector.broadcast %cst : f32 to vector<128x128xf32>
    %15 = arith.select %13, %8, %14 : vector<128x128xi1>, vector<128x128xf32>
    %16 = arith.truncf %15 : vector<128x128xf32> to vector<128x128xbf16>
    %cst_1 = arith.constant dense<0.000000e+00> : vector<128x128xf32>
    %17 = tpu.matmul %16, %16, %cst_1 {dimension_numbers = #tpu.dot_dimension_numbers<[1], [1], [0], [0], [0, 0, 1, 0], [], []>} : vector<128x128xbf16>, vector<128x128xbf16>, vector<128x128xf32> -> vector<128x128xf32>
    %18 = arith.negf %17 : vector<128x128xf32>
    %19 = math.exp %18 : vector<128x128xf32>
    %cst_2 = arith.constant 1.000000e+00 : f32
    %20 = vector.broadcast %cst_2 : f32 to vector<128x128xf32>
    %21 = arith.addf %20, %19 : vector<128x128xf32>
    %22 = arith.divf %20, %21 : vector<128x128xf32>
    %c0_3 = arith.constant 0 : index
    %c0_4 = arith.constant 0 : index
    %c0_5 = arith.constant 0 : index
    %23 = vector.load %arg24[%c0_3, %c0_4, %c0_5] : memref<1x128x128xf32, #tpu.memory_space<vmem>>, vector<1x128x128xf32>
    %24 = vector.shape_cast %23 : vector<1x128x128xf32> to vector<128x128xf32>
    %25 = vector.shape_cast %22 : vector<128x128xf32> to vector<1x128x128xf32>
    tpu.vector_store %arg24[%c0_3, %c0_4, %c0_5], %25 {strides = array<i32>} : memref<1x128x128xf32, #tpu.memory_space<vmem>>, vector<1x128x128xf32>,
    return
  }
  func.func @transform_0(%arg0: i32, %arg1: memref<2xi32, #tpu.memory_space<smem>>, %arg2: memref<2xi32, #tpu.memory_space<smem>>) -> (i32, i32) {
    %c0_i32 = arith.constant 0 : i32
    %c0_i32_0 = arith.constant 0 : i32
    %c0_i32_1 = arith.constant 0 : i32
    return %c0_i32, %c0_i32_0 : i32, i32
  }
  func.func @transform_1(%arg0: i32, %arg1: memref<2xi32, #tpu.memory_space<smem>>, %arg2: memref<2xi32, #tpu.memory_space<smem>>) -> (i32, i32) {
    %c0_i32 = arith.constant 0 : i32
    %c0_i32_0 = arith.constant 0 : i32
    %c0_i32_1 = arith.constant 0 : i32
    return %c0_i32, %c0_i32_0 : i32, i32
  }
  func.func @transform_2(%arg0: i32, %arg1: memref<2xi32, #tpu.memory_space<smem>>, %arg2: memref<2xi32, #tpu.memory_space<smem>>) -> (i32, i32) {
    %c0_i32 = arith.constant 0 : i32
    %c0_i32_0 = arith.constant 0 : i32
    %c0_i32_1 = arith.constant 0 : i32
    return %c0_i32, %c0_i32_0 : i32, i32
  }
  func.func @transform_3(%arg0: i32, %arg1: memref<2xi32, #tpu.memory_space<smem>>, %arg2: memref<2xi32, #tpu.memory_space<smem>>) -> (i32, i32) {
    %c0_i32 = arith.constant 0 : i32
    %c0_i32_0 = arith.constant 0 : i32
    %c0_i32_1 = arith.constant 0 : i32
    return %c0_i32, %c0_i32_0 : i32, i32
  }
  func.func @transform_4(%arg0: i32, %arg1: memref<2xi32, #tpu.memory_space<smem>>, %arg2: memref<2xi32, #tpu.memory_space<smem>>) -> (i32, i32) {
    %c0_i32 = arith.constant 0 : i32
    %c0_i32_0 = arith.constant 0 : i32
    %c0_i32_1 = arith.constant 0 : i32
    return %c0_i32, %c0_i32_0 : i32, i32
  }
  func.func @transform_5(%arg0: i32, %arg1: memref<2xi32, #tpu.memory_space<smem>>, %arg2: memref<2xi32, #tpu.memory_space<smem>>) -> (i32, i32) {
    %c0_i32 = arith.constant 0 : i32
    %c0_i32_0 = arith.constant 0 : i32
    %c0_i32_1 = arith.constant 0 : i32
    return %c0_i32, %c0_i32_0 : i32, i32
  }
  func.func @transform_6(%arg0: i32, %arg1: memref<2xi32, #tpu.memory_space<smem>>, %arg2: memref<2xi32, #tpu.memory_space<smem>>) -> (i32, i32) {
    %c0_i32 = arith.constant 0 : i32
    %c0_i32_0 = arith.constant 0 : i32
    %c0_i32_1 = arith.constant 0 : i32
    return %c0_i32, %c0_i32_0 : i32, i32
  }
  func.func @transform_7(%arg0: i32, %arg1: memref<2xi32, #tpu.memory_space<smem>>, %arg2: memref<2xi32, #tpu.memory_space<smem>>) -> (i32, i32) {
    %c0_i32 = arith.constant 0 : i32
    %c0_i32_0 = arith.constant 0 : i32
    %c0_i32_1 = arith.constant 0 : i32
    return %c0_i32, %c0_i32_0 : i32, i32
  }
  func.func @transform_8(%arg0: i32, %arg1: memref<2xi32, #tpu.memory_space<smem>>, %arg2: memref<2xi32, #tpu.memory_space<smem>>) -> (i32, i32) {
    %c0_i32 = arith.constant 0 : i32
    %c0_i32_0 = arith.constant 0 : i32
    %c0_i32_1 = arith.constant 0 : i32
    return %c0_i32, %c0_i32_0 : i32, i32
  }
  func.func @transform_9(%arg0: i32, %arg1: memref<2xi32, #tpu.memory_space<smem>>, %arg2: memref<2xi32, #tpu.memory_space<smem>>) -> (i32, i32) {
    %c0_i32 = arith.constant 0 : i32
    %c0_i32_0 = arith.constant 0 : i32
    %c0_i32_1 = arith.constant 0 : i32
    return %c0_i32, %c0_i32_0 : i32, i32
  }
  func.func @transform_10(%arg0: i32, %arg1: memref<2xi32, #tpu.memory_space<smem>>, %arg2: memref<2xi32, #tpu.memory_space<smem>>) -> (i32, i32) {
    %c0_i32 = arith.constant 0 : i32
    %c0_i32_0 = arith.constant 0 : i32
    %c0_i32_1 = arith.constant 0 : i32
    return %c0_i32, %c0_i32_0 : i32, i32
  }
  func.func @transform_11(%arg0: i32, %arg1: memref<2xi32, #tpu.memory_space<smem>>, %arg2: memref<2xi32, #tpu.memory_space<smem>>) -> (i32, i32) {
    %c0_i32 = arith.constant 0 : i32
    %c0_i32_0 = arith.constant 0 : i32
    %c0_i32_1 = arith.constant 0 : i32
    return %c0_i32, %c0_i32_0 : i32, i32
  }
  func.func @transform_12(%arg0: i32, %arg1: memref<2xi32, #tpu.memory_space<smem>>, %arg2: memref<2xi32, #tpu.memory_space<smem>>) -> (i32, i32) {
    %c0_i32 = arith.constant 0 : i32
    %c0_i32_0 = arith.constant 0 : i32
    %c0_i32_1 = arith.constant 0 : i32
    return %c0_i32, %c0_i32_0 : i32, i32
  }
  func.func @transform_13(%arg0: i32, %arg1: memref<2xi32, #tpu.memory_space<smem>>, %arg2: memref<2xi32, #tpu.memory_space<smem>>) -> (i32, i32) {
    %c0_i32 = arith.constant 0 : i32
    %c0_i32_0 = arith.constant 0 : i32
    %c0_i32_1 = arith.constant 0 : i32
    return %c0_i32, %c0_i32_0 : i32, i32
  }
  func.func @transform_14(%arg0: i32, %arg1: memref<2xi32, #tpu.memory_space<smem>>, %arg2: memref<2xi32, #tpu.memory_space<smem>>) -> (i32, i32) {
    %c0_i32 = arith.constant 0 : i32
    %c0_i32_0 = arith.constant 0 : i32
    %c0_i32_1 = arith.constant 0 : i32
    return %c0_i32, %c0_i32_0 : i32, i32
  }
  func.func @transform_15(%arg0: i32, %arg1: memref<2xi32, #tpu.memory_space<smem>>, %arg2: memref<2xi32, #tpu.memory_space<smem>>) -> (i32, i32) {
    %c0_i32 = arith.constant 0 : i32
    %c0_i32_0 = arith.constant 0 : i32
    %c0_i32_1 = arith.constant 0 : i32
    return %c0_i32, %c0_i32_0 : i32, i32
  }
  func.func @transform_16(%arg0: i32, %arg1: memref<2xi32, #tpu.memory_space<smem>>, %arg2: memref<2xi32, #tpu.memory_space<smem>>) -> (i32, i32) {
    %c0_i32 = arith.constant 0 : i32
    %c0_i32_0 = arith.constant 0 : i32
    %c0_i32_1 = arith.constant 0 : i32
    return %c0_i32, %c0_i32_0 : i32, i32
  }
  func.func @transform_17(%arg0: i32, %arg1: memref<2xi32, #tpu.memory_space<smem>>, %arg2: memref<2xi32, #tpu.memory_space<smem>>) -> (i32, i32) {
    %c0_i32 = arith.constant 0 : i32
    %c0_i32_0 = arith.constant 0 : i32
    %c0_i32_1 = arith.constant 0 : i32
    return %c0_i32, %c0_i32_0 : i32, i32
  }
  func.func @transform_18(%arg0: i32, %arg1: memref<2xi32, #tpu.memory_space<smem>>, %arg2: memref<2xi32, #tpu.memory_space<smem>>) -> (i32, i32) {
    %c0_i32 = arith.constant 0 : i32
    %c0_i32_0 = arith.constant 0 : i32
    %c0_i32_1 = arith.constant 0 : i32
    return %c0_i32, %c0_i32_0 : i32, i32
  }
  func.func @transform_19(%arg0: i32, %arg1: memref<2xi32, #tpu.memory_space<smem>>, %arg2: memref<2xi32, #tpu.memory_space<smem>>) -> (i32, i32) {
    %c0_i32 = arith.constant 0 : i32
    %c0_i32_0 = arith.constant 0 : i32
    %c0_i32_1 = arith.constant 0 : i32
    return %c0_i32, %c0_i32_0 : i32, i32
  }
  func.func @transform_20(%arg0: i32, %arg1: memref<2xi32, #tpu.memory_space<smem>>, %arg2: memref<2xi32, #tpu.memory_space<smem>>) -> (i32, i32) {
    %c0_i32 = arith.constant 0 : i32
    %c0_i32_0 = arith.constant 0 : i32
    %c0_i32_1 = arith.constant 0 : i32
    return %c0_i32, %c0_i32_0 : i32, i32
  }
  func.func @transform_21(%arg0: i32, %arg1: memref<2xi32, #tpu.memory_space<smem>>, %arg2: memref<2xi32, #tpu.memory_space<smem>>) -> (i32, i32, i32) {
    %c0_i32 = arith.constant 0 : i32
    %c0_i32_0 = arith.constant 0 : i32
    %c0_i32_1 = arith.constant 0 : i32
    return %arg0, %c0_i32, %c0_i32_0 : i32, i32, i32
  }
}

</mosaic_0001>

<bundles_post_ra>
// kernel: graph_bert_autoencoder_forward.1
= control target key start
LH: loop header
LB: loop body
LE: loop exit
PB: predicated region body
PF: predicated region fallthrough
CT: control target
= control target key end

     0   :  { %s3276_s0 = inlined_call_operand.vmem [shape: s32[2], index: 0, kind: input, shape index: {}]   ;;  %s3277_s2 = inlined_call_operand.vmem [shape: f32[16,128], index: 2, kind: input, shape index: {}]   ;;  %s3278_s3 = inlined_call_operand.vmem [shape: f32[1,128], index: 3, kind: input, shape index: {}]   ;;  %s3279_s4 = inlined_call_operand.vmem [shape: f32[1,128], index: 4, kind: input, shape index: {}]   ;;  %s3280_s5 = inlined_call_operand.vmem [shape: bf16[16,16], index: 5, kind: input, shape index: {}]   ;;  %s3281_s6 = inlined_call_operand.vmem [shape: bf16[128,128], index: 6, kind: input, shape index: {}]   ;;  %s3282_s7 = inlined_call_operand.vmem [shape: f32[1,128], index: 7, kind: input, shape index: {}]   ;;  %s3283_s8 = inlined_call_operand.vmem [shape: bf16[128,128], index: 8, kind: input, shape index: {}]   ;;  %s3284_s9 = inlined_call_operand.vmem [shape: f32[1,128], index: 9, kind: input, shape index: {}]   ;;  %s3285_s10 = inlined_call_operand.vmem [shape: bf16[128,128], index: 10, kind: input, shape index: {}]   ;;  %s3286_s11 = inlined_call_operand.vmem [shape: f32[1,128], index: 11, kind: input, shape index: {}]   ;;  %s3287_s12 = inlined_call_operand.vmem [shape: bf16[128,128], index: 12, kind: input, shape index: {}]   ;;  %s3288_s13 = inlined_call_operand.vmem [shape: f32[1,128], index: 13, kind: input, shape index: {}]   ;;  %s3289_s14 = inlined_call_operand.vmem [shape: bf16[128,128], index: 14, kind: input, shape index: {}]   ;;  %s3290_s15 = inlined_call_operand.vmem [shape: f32[1,128], index: 15, kind: input, shape index: {}]   ;;  %s3291_s16 = inlined_call_operand.vmem [shape: bf16[8,16], index: 16, kind: input, shape index: {}]   ;;  %s3292_s17 = inlined_call_operand.vmem [shape: bf16[128,128], index: 17, kind: input, shape index: {}]   ;;  %s3293_s18 = inlined_call_operand.vmem [shape: f32[1,128], index: 18, kind: input, shape index: {}]   ;;  %s3294_s19 = inlined_call_operand.vmem [shape: f32[16,128], index: 19, kind: output, shape index: {0}]   ;;  %s3295_s20 = inlined_call_operand.vmem [shape: f32[16,128], index: 20, kind: output, shape index: {1}]   ;;  %s3296_s21 = inlined_call_operand.vmem [shape: f32[8,128], index: 21, kind: output, shape index: {2}]   ;;  %s3297_s22 = inlined_call_operand.vmem [shape: f32[16,128], index: 22, kind: output, shape index: {3}]   ;;  %s3298_s23 = inlined_call_operand.vmem [shape: f32[2,128,128], index: 23, kind: output, shape index: {4}]   ;;  %s3299_s1 = inlined_call_operand.vmem [shape: s32[2], index: 1, kind: input, shape index: {}]  }
   0x1   :  { %3303 = sst [smem:[#allocation7_spill]] %s3276_s0 }
   0x2   :  { %3304 = sst [smem:[#allocation8_spill]] %s3277_s2  ;;  %s3312_s24 = sld [smem:[#allocation7_spill]] }
   0x3   :  { %3305 = sst [smem:[#allocation9_spill]] %s3278_s3  ;;  %s33_s2 = sshll.u32 %s3299_s1, 4  ;;  %s34_s2 = int_to_ptr.vmem [resolvable:$true] %s33_s2 }
   0x4   :  { %3306 = sst [smem:[#allocation10_spill]] %s3279_s4 }
   0x5   :  { %3307 = sst [smem:[#allocation11_spill]] %s3280_s5 }
   0x6   :  { %3308 = sst [smem:[#allocation12_spill]] %s3281_s6 }
   0x7   :  { %3309 = sst [smem:[#allocation13_spill]] %s3282_s7 }
   0x8   :  { %3310 = sst [smem:[#allocation14_spill]] %s3283_s8 }
   0x9   :  { %3311 = sst [smem:[#allocation15_spill]] %s3293_s18  ;;  %s29_s18 = sshll.u32 %s3312_s24, 4  ;;  %s30_s18 = int_to_ptr.vmem [resolvable:$true] %s29_s18 }
   0xa   :  { %s2606_s26 = scalar_lea.vmem %s30_s18, 16  ;;  %p2611_p1 = scmp.lt.s32.totalorder %s30_s18, %s30_s18 }
   0xb   :  { %p2607_p0 = scmp.ne.s32.totalorder %s30_s18, %s2606_s26  ;;  %p2612_p2 = scmp.lt.s32.totalorder %s2606_s26, %s2606_s26 }
   0xd   :  { %p2613_p3 = por %p2612_p2, %p2611_p1 }
   0xf   :  { %p2614_p4 = pnand %p2613_p3, %p2607_p0 }
  0x11   :  { %2617 = shalt.err (!%p2614_p4)  }
  0x12   :  { %s2640_s3 = smov [#allocation4]   ;;  %s2618_s7 = scalar_lea.vmem %s34_s2, 16 }
  0x13   :  { %32 = dma.vmem_to_smem %s30_s18, 16, %s2640_s3, [#allocation3] }
  0x14   :  { %p2619_p5 = scmp.ne.s32.totalorder %s34_s2, %s2618_s7  ;;  %p2623_p6 = scmp.lt.s32.totalorder %s34_s2, %s34_s2 }
  0x15   :  { %p2624_p7 = scmp.lt.s32.totalorder %s2618_s7, %s2618_s7 }
  0x17   :  { %p2625_p8 = por %p2624_p7, %p2623_p6 }
  0x19   :  { %p2626_p9 = pnand %p2625_p8, %p2619_p5 }
  0x1b   :  { %2629 = shalt.err (!%p2626_p9)  }
  0x1c   :  { %s2641_s27 = smov [#allocation5]  }
  0x1d   :  { %36 = dma.vmem_to_smem %s34_s2, 16, %s2641_s27, [#allocation3] }
  0x1e   :  { %2634 = dma.done.wait [#allocation3], 32 }
  0x1f   :  { %2635 = vsyncadd [#allocation3], 4294967264 }
  0x20   :  { %38 = sfence }
  0x21   :  { %s2770_s1 = smov 0  }
  0x22 LB: > { %s2776_s18 = sadd.s32 4294967295, %s2638_s1   ;;  %p2057_p10 = scmp.ge.s32.totalorder %s2638_s1, 1  ;;  %s2638_s1 = sphi %s2770_s1, %s44_s1  }
  0x23   : > { %p578_p11 = scmp.lt.s32.totalorder %s2638_s1, 3 }
  0x25   : > { %p579_p12 = pnand %p2057_p10, %p578_p11 }
  0x26   : > { %p633_p13 = scmp.lt.s32.totalorder (!%p579_p12), %s2776_s18, 1  ;;  %p2060_p0 = scmp.ne.s32.totalorder (!%p579_p12), %s2776_s18, 0 }
  0x27   : > { %582 = sbr.rel (%p579_p12) target bundleno = 3159 (0xc57), region = 88 }
  0x2e   : > { %s634_s8 = scalar_select %p633_p13, %s2776_s18, 1 }
  0x2f   : > { %642 = sbr.rel (%p2060_p0) target bundleno = 2817 (0xb01), region = 92  ;;  %s3313_s24 = sld [smem:[#allocation8_spill]] (!%p2060_p0)  ;;  %v2642_v3 = vmov (!%p2060_p0), 0.0   ;;  %v645_v4 = vlaneseq (!%p2060_p0)  ;;  %vm2643_vm1 = vmmov (!%p2060_p0), 0   ;;  %vm815_vm2 = vcmask (!%p2060_p0), 130048  }
  0x30   : > { %s2190_s28 = sshll.u32 %s634_s8, 7  ;;  %s3314_s3 = sld [smem:[#allocation12_spill]] (!%p2060_p0)  ;;  %2273 = vmatprep.subr.bf16.mxu0 (!%p2060_p0), %v2642_v3  ;;  %1492 = vst [vmem:[#allocation2 + $0x10] sm:$0xff] (!%p2060_p0), %v2642_v3  ;;  %1493 = vst [vmem:[#allocation2 + $0x18] sm:$0xff] (!%p2060_p0), %v2642_v3  ;;  %2293 = vmatprep.subr.bf16.mxu1 (!%p2060_p0), %v2642_v3 }
  0x31   : > { %s2785_s0 = scalar_lea.vmem %s3298_s23, %s2190_s28  ;;  %1494 = vst [vmem:[#allocation2 + $0x20] sm:$0xff] (!%p2060_p0), %v2642_v3  ;;  %1495 = vst [vmem:[#allocation2 + $0x28] sm:$0xff] (!%p2060_p0), %v2642_v3  ;;  %v646_v5 = vand.u32 (!%p2060_p0), 127, %v645_v4  ;;  %2289 = vmatprep.mubr.msk.bf16.mxu0 (!%p2060_p0), %vm2643_vm1, %v2642_v3  ;;  %2295 = vmatprep.mubr.msk.bf16.mxu1 (!%p2060_p0), %vm2643_vm1, %v2642_v3  ;;  %s3315_s29 = sld [smem:[#allocation9_spill]] (!%p2060_p0) }
  0x32   : > { %1496 = vst [vmem:[#allocation2 + $0x30] sm:$0xff] (!%p2060_p0), %v2642_v3  ;;  %1497 = vst [vmem:[#allocation2 + $0x38] sm:$0xff] (!%p2060_p0), %v2642_v3  ;;  %s3316_s30 = sld [smem:[#allocation10_spill]] (!%p2060_p0)  ;;  %s3317_s8 = sld [smem:[#allocation11_spill]] (!%p2060_p0) }
  0x33   : > { %1498 = vst [vmem:[#allocation2 + $0x40] sm:$0xff] (!%p2060_p0), %v2642_v3  ;;  %1499 = vst [vmem:[#allocation2 + $0x48] sm:$0xff] (!%p2060_p0), %v2642_v3  ;;  %vm647_vm0 = vcmp.lt.s32.totalorder (!%p2060_p0), %v646_v5, 32  ;;  %s3318_s4 = sld [smem:[#allocation14_spill]] (!%p2060_p0)  ;;  %s3319_s26 = sld [smem:[#allocation13_spill]] (!%p2060_p0) }
  0x34   : > { %1500 = vst [vmem:[#allocation2 + $0x50] sm:$0xff] (!%p2060_p0), %v2642_v3  ;;  %1501 = vst [vmem:[#allocation2 + $0x58] sm:$0xff] (!%p2060_p0), %v2642_v3  ;;  %s3320_s5 = sld [smem:[#allocation15_spill]] (!%p2060_p0) }
  0x35   : > { %v643_v0 = vld [vmem:[%s3313_s24] sm:$0xff] (!%p2060_p0)  ;;  %v644_v1 = vld [vmem:[%s3313_s24 + $0x8] sm:$0xff] (!%p2060_p0)  ;;  %1502 = vst [vmem:[#allocation2 + $0x60] sm:$0xff] (!%p2060_p0), %v2642_v3  ;;  %1503 = vst [vmem:[#allocation2 + $0x68] sm:$0xff] (!%p2060_p0), %v2642_v3 }
  0x36   : > { %648 = vadd.xlane.f32.xlu0 %v643_v0  ;;  %v2489_v2 = vld [vmem:[%s3314_s3] sm:$0xff]   ;;  %1504 = vst [vmem:[#allocation2 + $0x70] sm:$0xff] %v2642_v3  ;;  %1505 = vst [vmem:[#allocation2 + $0x78] sm:$0xff] %v2642_v3  ;;  %v2490_v16 = vld [vmem:[%s3314_s3 + $0x8] sm:$0xff]  }
  0x37   : > { %1506 = vst [vmem:[#allocation2 + $0x80] sm:$0xff] %v2642_v3  ;;  %1507 = vst [vmem:[#allocation2 + $0x88] sm:$0xff] %v2642_v3  ;;  %2274 = vmatpush3.bf16.msra.mxu0 %v2489_v2  ;;  %v2491_v17 = vld [vmem:[%s3314_s3 + $0x10] sm:$0xff]   ;;  %v2492_v18 = vld [vmem:[%s3314_s3 + $0x18] sm:$0xff]  }
  0x38   : > { %2275 = vmatprep.subr.bf16.mxu0 %v2642_v3  ;;  %v2493_v19 = vld [vmem:[%s3314_s3 + $0x20] sm:$0xff]   ;;  %v2494_v20 = vld [vmem:[%s3314_s3 + $0x28] sm:$0xff]   ;;  %v2495_v21 = vld [vmem:[%s3314_s3 + $0x30] sm:$0xff]  }
  0x39   : > { %v2496_v22 = vld [vmem:[%s3314_s3 + $0x38] sm:$0xff]   ;;  %v2061_v30 = vld [vmem:[%s3315_s29] ss:$0 sm:$0xff]  ;;  %v2499_v47 = vld [vmem:[%s3318_s4 + $0x8] sm:$0xff]  }
  0x3a   : > { %650 = vadd.xlane.f32.xlu0 %v644_v1  ;;  %v2062_v32 = vld [vmem:[%s3316_s30] ss:$0 sm:$0xff]  ;;  %v2500_v48 = vld [vmem:[%s3318_s4 + $0x10] sm:$0xff]   ;;  %v2501_v49 = vld [vmem:[%s3318_s4 + $0x18] sm:$0xff]  }
  0x3b   : > { %2276 = vmatpush3.bf16.msra.mxu0 %v2490_v16  ;;  %v2865_v45 = vld [vmem:[%s3317_s8] sm:$0xff]   ;;  %v2503_v51 = vld [vmem:[%s3318_s4 + $0x28] sm:$0xff]   ;;  %v2504_v52 = vld [vmem:[%s3318_s4 + $0x30] sm:$0xff]  }
  0x3c   : > { %2277 = vmatprep.subr.bf16.mxu0 %v2642_v3  ;;  %v2498_v46 = vld [vmem:[%s3318_s4] sm:$0xff]   ;;  %v2505_v53 = vld [vmem:[%s3318_s4 + $0x38] sm:$0xff]  }
  0x3d   : > { %v2502_v50 = vld [vmem:[%s3318_s4 + $0x20] sm:$0xff]  }
  0x3e   : > { %v2071_v54 = vld [vmem:[%s3319_s26] ss:$0 sm:$0xff] }
  0x3f   : > { %2278 = vmatpush3.bf16.msra.mxu0 %v2491_v17 }
  0x40   : > { %2279 = vmatprep.subr.bf16.mxu0 %v2642_v3 }
  0x43   : > { %2280 = vmatpush3.bf16.msra.mxu0 %v2492_v18 }
  0x44   : > { %2281 = vmatprep.subr.bf16.mxu0 %v2642_v3 }
  0x47   : > { %2282 = vmatpush3.bf16.msra.mxu0 %v2493_v19 }
  0x48   : > { %2283 = vmatprep.subr.bf16.mxu0 %v2642_v3 }
  0x4b   : > { %2284 = vmatpush3.bf16.msra.mxu0 %v2494_v20 }
  0x4c   : > { %2285 = vmatprep.subr.bf16.mxu0 %v2642_v3 }
  0x4f   : > { %2286 = vmatpush3.bf16.msra.mxu0 %v2495_v21 }
  0x50   : > { %2287 = vmatprep.subr.bf16.mxu0 %v2642_v3 }
  0x53   : > { %2288 = vmatpush3.bf16.msra.mxu0 %v2496_v22 }
  0x54   : > { %2345 = vmatprep.subr.bf16.mxu0 %v2642_v3 }
  0xc3   : > { %v649_v6 = vpop.xlane.xlu0 %648 }
  0xc4   : > { %v652_v7 = vmul.f32 0.03125, %v649_v6  ;;  %v2506_v6 = vld [vmem:[%s3285_s10] sm:$0xff]  }
  0xc6   : > { %v654_v8 = vsub.f32 %v643_v0, %v652_v7  ;;  %v2507_v7 = vld [vmem:[%s3285_s10 + $0x8] sm:$0xff]  }
  0xc7   : > { %v651_v9 = vpop.xlane.xlu0 %650 }
  0xc8   : > { %v653_v10 = vmul.f32 0.03125, %v651_v9  ;;  %v658_v11 = vsel %vm647_vm0, %v654_v8, 0.0  ;;  %v2508_v8 = vld [vmem:[%s3285_s10 + $0x10] sm:$0xff]   ;;  %v2509_v9 = vld [vmem:[%s3285_s10 + $0x18] sm:$0xff]  }
  0xc9   : > { %v660_v12 = vmul.f32 %v658_v11, %v658_v11 }
  0xca   : > { %v655_v13 = vsub.f32 %v644_v1, %v653_v10  ;;  %v2510_v10 = vld [vmem:[%s3285_s10 + $0x20] sm:$0xff]  }
  0xcb   : > { %662 = vadd.xlane.f32.xlu1 %v660_v12  ;;  %v2512_v12 = vld [vmem:[%s3285_s10 + $0x30] sm:$0xff]  }
  0xcc   : > { %v659_v14 = vsel %vm647_vm0, %v655_v13, 0.0  ;;  %v2513_v13 = vld [vmem:[%s3285_s10 + $0x38] sm:$0xff]  }
  0xcd   : > { %v661_v15 = vmul.f32 %v659_v14, %v659_v14 }
  0xcf   : > { %664 = vadd.xlane.f32.xlu1 %v661_v15 }
 0x158   : > { %v663_v23 = vpop.xlane.xlu1 %662 }
 0x159   : > { %v666_v24 = vmul.f32 0.03125, %v663_v23 }
 0x15b   : > { %v668_v25 = vadd.f32 1e-05, %v666_v24 }
 0x15c   : > { %v665_v26 = vpop.xlane.xlu1 %664 }
 0x15d   : > { %2538 = vrsqrt.f32 %v668_v25  ;;  %v667_v27 = vmul.f32 0.03125, %v665_v26 }
 0x15f   : > { %v669_v28 = vadd.f32 1e-05, %v667_v27 }
 0x161   : > { %2540 = vrsqrt.f32 %v669_v28 }
 0x167   : > { %v2539_v29 = vpop.eup %2538 }
 0x168   : > { %v672_v31 = vmul.f32 %v2539_v29, %v658_v11  ;;  %v2511_v11 = vld [vmem:[%s3285_s10 + $0x28] sm:$0xff]   ;;  %v2514_v29 = vld [vmem:[%s3287_s12] sm:$0xff]  }
 0x16a   : > { %v681_v33 = vmul.f32 %v2061_v30, %v672_v31  ;;  %v2516_v31 = vld [vmem:[%s3287_s12 + $0x10] sm:$0xff]  }
 0x16b   : > { %v2541_v34 = vpop.eup %2540 }
 0x16c   : > { %v673_v35 = vmul.f32 %v2541_v34, %v659_v14  ;;  %v690_v36 = vadd.f32 %v2062_v32, %v681_v33  ;;  %v2082_v14 = vld [vmem:[%s3284_s9] ss:$0 sm:$0xff]  ;;  %v2519_v34 = vld [vmem:[%s3287_s12 + $0x28] sm:$0xff]  }
 0x16d   : > { %v2518_v33 = vld [vmem:[%s3287_s12 + $0x20] sm:$0xff]  }
 0x16e   : > { %v682_v37 = vmul.f32 %v2061_v30, %v673_v35  ;;  %692 = vst [vmem:[%s3294_s19] sm:$0xff] %v690_v36  ;;  %v2515_v30 = vld [vmem:[%s3287_s12 + $0x8] sm:$0xff]   ;;  %v2520_v35 = vld [vmem:[%s3287_s12 + $0x30] sm:$0xff]  }
 0x170   : > { %v691_v38 = vadd.f32 %v2062_v32, %v682_v37  ;;  %v2517_v32 = vld [vmem:[%s3287_s12 + $0x18] sm:$0xff]   ;;  %v2092_v37 = vld [vmem:[%s3286_s11] ss:$0 sm:$0xff] }
 0x172   : > { %693 = vst [vmem:[%s3294_s19 + $0x8] sm:$0xff] %v691_v38  ;;  %v696_v39 = vpack.c.bf16 %v691_v38, %v690_v36  ;;  %v2521_v36 = vld [vmem:[%s3287_s12 + $0x38] sm:$0xff]  }
 0x174   : > { %2290 = vmatmul.mubr.bf16.vlgmr.msra.gmra.mrb[0].mxu0 %v696_v39 }
 0x175   : > { %2347 = vmatprep.mubr.msk.bf16.mxu0 %vm2643_vm1, %v2642_v3 }
 0x247   : > { %v795_v40 = vpop.f32.mrb[0].mxu0 }
 0x248   : > { %v2291_v41 = vpop.f32.mrb[1].mxu0 }
 0x249   : > { %v798_v42 = vpop.f32.mrb[2].mxu0 }
 0x24a   : > { %v802_v43 = vpack.c.bf16 %v798_v42, %v795_v40  ;;  %v2292_v44 = vpop.f32.mrb[3].mxu0 }
 0x24c   : > { %2294 = vmatpush3.bf16.msra.mxu1 %v802_v43 }
 0x24d   : > { %2299 = vmatprep.subr.bf16.mxu1 %v2642_v3 }
 0x24f   : > { %2296 = vmatmul.mubr.msk.bf16.vlgmr.msra.gmra.mrb[0].mxu1 %vm815_vm2, %v2865_v45 }
 0x250   : > { %2300 = vmatpush3.bf16.msra.mxu1 %v2498_v46  ;;  %2315 = vmatprep.mubr.msk.bf16.mxu1 %vm2643_vm1, %v2642_v3 }
 0x251   : > { %2301 = vmatprep.subr.bf16.mxu1 %v2642_v3 }
 0x254   : > { %2302 = vmatpush3.bf16.msra.mxu1 %v2499_v47 }
 0x255   : > { %2303 = vmatprep.subr.bf16.mxu1 %v2642_v3 }
 0x258   : > { %2304 = vmatpush3.bf16.msra.mxu1 %v2500_v48 }
 0x259   : > { %2305 = vmatprep.subr.bf16.mxu1 %v2642_v3 }
 0x25c   : > { %2306 = vmatpush3.bf16.msra.mxu1 %v2501_v49 }
 0x25d   : > { %2307 = vmatprep.subr.bf16.mxu1 %v2642_v3 }
 0x260   : > { %2308 = vmatpush3.bf16.msra.mxu1 %v2502_v50 }
 0x261   : > { %2309 = vmatprep.subr.bf16.mxu1 %v2642_v3 }
 0x264   : > { %2310 = vmatpush3.bf16.msra.mxu1 %v2503_v51 }
 0x265   : > { %2311 = vmatprep.subr.bf16.mxu1 %v2642_v3 }
 0x268   : > { %2312 = vmatpush3.bf16.msra.mxu1 %v2504_v52 }
 0x269   : > { %2313 = vmatprep.subr.bf16.mxu1 %v2642_v3 }
 0x26c   : > { %2314 = vmatpush3.bf16.msra.mxu1 %v2505_v53  ;;  %v2522_v53 = vld [vmem:[%s3289_s14] sm:$0xff]  }
 0x26d   : > { %2319 = vmatprep.subr.bf16.mxu1 %v2642_v3 }
 0x322   : > { %v853_v55 = vpop.f32.mrb[0].mxu1 }
 0x323   : > { %v854_v56 = vadd.f32 %v2071_v54, %v853_v55  ;;  %v2297_v57 = vpop.f32.mrb[1].mxu1  ;;  %v2524_v55 = vld [vmem:[%s3289_s14 + $0x10] sm:$0xff]  }
 0x324   : > { %v856_v58 = vpop.f32.mrb[2].mxu1  ;;  %v2526_v57 = vld [vmem:[%s3289_s14 + $0x20] sm:$0xff]  }
 0x325   : > { %v857_v59 = vadd.f32 %v2071_v54, %v856_v58  ;;  %v2298_v60 = vpop.f32.mrb[3].mxu1  ;;  %v860_v61 = vmax.f32 %v854_v56, 0.0  ;;  %v2523_v54 = vld [vmem:[%s3289_s14 + $0x8] sm:$0xff]   ;;  %v2525_v56 = vld [vmem:[%s3289_s14 + $0x18] sm:$0xff]  }
 0x326   : > { %v2527_v58 = vld [vmem:[%s3289_s14 + $0x28] sm:$0xff]   ;;  %v2529_v60 = vld [vmem:[%s3289_s14 + $0x38] sm:$0xff]  }
 0x327   : > { %v861_v62 = vmax.f32 %v857_v59, 0.0  ;;  %v2528_v59 = vld [vmem:[%s3289_s14 + $0x30] sm:$0xff]  }
 0x329   : > { %v862_v63 = vpack.c.bf16 %v861_v62, %v860_v61  ;;  %v2102_v61 = vld [vmem:[%s3288_s13] ss:$0 sm:$0xff] }
 0x32b   : > { %2316 = vmatmul.mubr.bf16.vlgmr.msra.gmra.mrb[4].mxu1 %v862_v63 }
 0x32c   : > { %2321 = vmatprep.mubr.msk.bf16.mxu1 %vm2643_vm1, %v2642_v3 }
 0x3fe   : > { %v961_v0 = vpop.f32.mrb[4].mxu1 }
 0x3ff   : > { %v2317_v1 = vpop.f32.mrb[5].mxu1 }
 0x400   : > { %v964_v2 = vpop.f32.mrb[6].mxu1 }
 0x401   : > { %v968_v4 = vpack.c.bf16 %v964_v2, %v961_v0  ;;  %v2318_v5 = vpop.f32.mrb[7].mxu1 }
 0x403   : > { %2320 = vmatpush3.bf16.msra.mxu1 %v968_v4 }
 0x404   : > { %2325 = vmatprep.subr.bf16.mxu1 %v2642_v3 }
 0x406   : > { %2322 = vmatmul.mubr.msk.bf16.vlgmr.msra.gmra.mrb[8].mxu1 %vm815_vm2, %v2865_v45 }
 0x407   : > { %2326 = vmatpush3.bf16.msra.mxu1 %v2506_v6  ;;  %2341 = vmatprep.mubr.msk.bf16.mxu1 %vm2643_vm1, %v2642_v3 }
 0x408   : > { %2327 = vmatprep.subr.bf16.mxu1 %v2642_v3 }
 0x40b   : > { %2328 = vmatpush3.bf16.msra.mxu1 %v2507_v7 }
 0x40c   : > { %2329 = vmatprep.subr.bf16.mxu1 %v2642_v3 }
 0x40f   : > { %2330 = vmatpush3.bf16.msra.mxu1 %v2508_v8 }
 0x410   : > { %2331 = vmatprep.subr.bf16.mxu1 %v2642_v3 }
 0x413   : > { %2332 = vmatpush3.bf16.msra.mxu1 %v2509_v9 }
 0x414   : > { %2333 = vmatprep.subr.bf16.mxu1 %v2642_v3 }
 0x417   : > { %2334 = vmatpush3.bf16.msra.mxu1 %v2510_v10 }
 0x418   : > { %2335 = vmatprep.subr.bf16.mxu1 %v2642_v3 }
 0x41b   : > { %2336 = vmatpush3.bf16.msra.mxu1 %v2511_v11 }
 0x41c   : > { %2337 = vmatprep.subr.bf16.mxu1 %v2642_v3 }
 0x41f   : > { %2338 = vmatpush3.bf16.msra.mxu1 %v2512_v12 }
 0x420   : > { %2339 = vmatprep.subr.bf16.mxu1 %v2642_v3 }
 0x423   : > { %2340 = vmatpush3.bf16.msra.mxu1 %v2513_v13  ;;  %v2112_v13 = vld [vmem:[%s3290_s15] ss:$0 sm:$0xff] }
 0x424   : > { %2371 = vmatprep.subr.bf16.mxu1 %v2642_v3 }
 0x4d9   : > { %v1010_v15 = vpop.f32.mrb[8].mxu1 }
 0x4da   : > { %v1011_v16 = vadd.f32 %v2082_v14, %v1010_v15  ;;  %v2323_v17 = vpop.f32.mrb[9].mxu1 }
 0x4db   : > { %v1013_v18 = vpop.f32.mrb[10].mxu1 }
 0x4dc   : > { %v1014_v19 = vadd.f32 %v2082_v14, %v1013_v18  ;;  %v2324_v20 = vpop.f32.mrb[11].mxu1  ;;  %v1017_v21 = vmax.f32 %v1011_v16, 0.0 }
 0x4dd   : > { %v1509_v20 = vld [vmem:[%s3291_s16] sm:$0xf] }
 0x4de   : > { %v1018_v22 = vmax.f32 %v1014_v19, 0.0 }
 0x4e0   : > { %v1019_v23 = vpack.c.bf16 %v1018_v22, %v1017_v21  ;;  %v2530_v21 = vld [vmem:[%s3292_s17] sm:$0xff]   ;;  %v2531_v22 = vld [vmem:[%s3292_s17 + $0x8] sm:$0xff]  }
 0x4e2   : > { %2342 = vmatmul.mubr.bf16.vlgmr.msra.gmra.mrb[12].mxu1 %v1019_v23  ;;  %v2532_v23 = vld [vmem:[%s3292_s17 + $0x10] sm:$0xff]  }
 0x4e3   : > { %2373 = vmatprep.mubr.msk.bf16.mxu1 %vm2643_vm1, %v2642_v3 }
 0x5b5   : > { %v1118_v24 = vpop.f32.mrb[12].mxu1 }
 0x5b6   : > { %v2343_v25 = vpop.f32.mrb[13].mxu1 }
 0x5b7   : > { %v1121_v26 = vpop.f32.mrb[14].mxu1  ;;  %v2534_v25 = vld [vmem:[%s3292_s17 + $0x20] sm:$0xff]  }
 0x5b8   : > { %v1125_v27 = vpack.c.bf16 %v1121_v26, %v1118_v24  ;;  %v2344_v28 = vpop.f32.mrb[15].mxu1  ;;  %v2533_v24 = vld [vmem:[%s3292_s17 + $0x18] sm:$0xff]   ;;  %v2535_v26 = vld [vmem:[%s3292_s17 + $0x28] sm:$0xff]  }
 0x5b9   : > { %v2537_v28 = vld [vmem:[%s3292_s17 + $0x38] sm:$0xff]  }
 0x5ba   : > { %2346 = vmatpush3.bf16.msra.mxu0 %v1125_v27  ;;  %v2536_v27 = vld [vmem:[%s3292_s17 + $0x30] sm:$0xff]  }
 0x5bb   : > { %2351 = vmatprep.subr.bf16.mxu0 %v2642_v3 }
 0x5bd   : > { %2348 = vmatmul.mubr.msk.bf16.vlgmr.msra.gmra.mrb[4].mxu0 %vm815_vm2, %v2865_v45 }
 0x5be   : > { %2352 = vmatpush3.bf16.msra.mxu0 %v2514_v29  ;;  %2367 = vmatprep.mubr.msk.bf16.mxu0 %vm2643_vm1, %v2642_v3 }
 0x5bf   : > { %2353 = vmatprep.subr.bf16.mxu0 %v2642_v3 }
 0x5c2   : > { %2354 = vmatpush3.bf16.msra.mxu0 %v2515_v30 }
 0x5c3   : > { %2355 = vmatprep.subr.bf16.mxu0 %v2642_v3 }
 0x5c6   : > { %2356 = vmatpush3.bf16.msra.mxu0 %v2516_v31 }
 0x5c7   : > { %2357 = vmatprep.subr.bf16.mxu0 %v2642_v3 }
 0x5ca   : > { %2358 = vmatpush3.bf16.msra.mxu0 %v2517_v32 }
 0x5cb   : > { %2359 = vmatprep.subr.bf16.mxu0 %v2642_v3 }
 0x5ce   : > { %2360 = vmatpush3.bf16.msra.mxu0 %v2518_v33  ;;  %v2115_v33 = vld [vmem:[%s3320_s5] ss:$0 sm:$0xff] }
 0x5cf   : > { %2361 = vmatprep.subr.bf16.mxu0 %v2642_v3 }
 0x5d2   : > { %2362 = vmatpush3.bf16.msra.mxu0 %v2519_v34 }
 0x5d3   : > { %2363 = vmatprep.subr.bf16.mxu0 %v2642_v3 }
 0x5d6   : > { %2364 = vmatpush3.bf16.msra.mxu0 %v2520_v35 }
 0x5d7   : > { %2365 = vmatprep.subr.bf16.mxu0 %v2642_v3 }
 0x5da   : > { %2366 = vmatpush3.bf16.msra.mxu0 %v2521_v36 }
 0x5db   : > { %2397 = vmatprep.subr.bf16.mxu0 %v2642_v3 }
 0x690   : > { %v1167_v38 = vpop.f32.mrb[4].mxu0 }
 0x691   : > { %v1168_v39 = vadd.f32 %v2092_v37, %v1167_v38  ;;  %v2349_v40 = vpop.f32.mrb[5].mxu0 }
 0x692   : > { %v1170_v41 = vpop.f32.mrb[6].mxu0 }
 0x693   : > { %v1171_v42 = vadd.f32 %v2092_v37, %v1170_v41  ;;  %v2350_v43 = vpop.f32.mrb[7].mxu0  ;;  %v1174_v44 = vmax.f32 %v1168_v39, 0.0 }
 0x695   : > { %v1175_v46 = vmax.f32 %v1171_v42, 0.0 }
 0x697   : > { %v1176_v47 = vpack.c.bf16 %v1175_v46, %v1174_v44 }
 0x699   : > { %2368 = vmatmul.mubr.bf16.vlgmr.msra.gmra.mrb[8].mxu0 %v1176_v47 }
 0x69a   : > { %2399 = vmatprep.mubr.msk.bf16.mxu0 %vm2643_vm1, %v2642_v3 }
 0x76c   : > { %v1275_v48 = vpop.f32.mrb[8].mxu0 }
 0x76d   : > { %v2369_v49 = vpop.f32.mrb[9].mxu0 }
 0x76e   : > { %v1278_v50 = vpop.f32.mrb[10].mxu0 }
 0x76f   : > { %v1282_v51 = vpack.c.bf16 %v1278_v50, %v1275_v48  ;;  %v2370_v52 = vpop.f32.mrb[11].mxu0 }
 0x771   : > { %2372 = vmatpush3.bf16.msra.mxu1 %v1282_v51 }
 0x772   : > { %2377 = vmatprep.subr.bf16.mxu1 %v2642_v3 }
 0x774   : > { %2374 = vmatmul.mubr.msk.bf16.vlgmr.msra.gmra.mrb[16].mxu1 %vm815_vm2, %v2865_v45 }
 0x775   : > { %2378 = vmatpush3.bf16.msra.mxu1 %v2522_v53  ;;  %2393 = vmatprep.mubr.msk.bf16.mxu1 %vm2643_vm1, %v2642_v3 }
 0x776   : > { %2379 = vmatprep.subr.bf16.mxu1 %v2642_v3 }
 0x779   : > { %2380 = vmatpush3.bf16.msra.mxu1 %v2523_v54 }
 0x77a   : > { %2381 = vmatprep.subr.bf16.mxu1 %v2642_v3 }
 0x77d   : > { %2382 = vmatpush3.bf16.msra.mxu1 %v2524_v55 }
 0x77e   : > { %2383 = vmatprep.subr.bf16.mxu1 %v2642_v3 }
 0x781   : > { %2384 = vmatpush3.bf16.msra.mxu1 %v2525_v56 }
 0x782   : > { %2385 = vmatprep.subr.bf16.mxu1 %v2642_v3 }
 0x785   : > { %2386 = vmatpush3.bf16.msra.mxu1 %v2526_v57 }
 0x786   : > { %2387 = vmatprep.subr.bf16.mxu1 %v2642_v3 }
 0x789   : > { %2388 = vmatpush3.bf16.msra.mxu1 %v2527_v58 }
 0x78a   : > { %2389 = vmatprep.subr.bf16.mxu1 %v2642_v3 }
 0x78d   : > { %2390 = vmatpush3.bf16.msra.mxu1 %v2528_v59 }
 0x78e   : > { %2391 = vmatprep.subr.bf16.mxu1 %v2642_v3 }
 0x791   : > { %2392 = vmatpush3.bf16.msra.mxu1 %v2529_v60 }
 0x847   : > { %v1324_v62 = vpop.f32.mrb[16].mxu1 }
 0x848   : > { %v1325_v63 = vadd.f32 %v2102_v61, %v1324_v62  ;;  %v2375_v0 = vpop.f32.mrb[17].mxu1 }
 0x849   : > { %v1327_v1 = vpop.f32.mrb[18].mxu1 }
 0x84a   : > { %v1328_v2 = vadd.f32 %v2102_v61, %v1327_v1  ;;  %v2376_v4 = vpop.f32.mrb[19].mxu1  ;;  %v1331_v5 = vmax.f32 %v1325_v63, 0.0 }
 0x84c   : > { %v1332_v6 = vmax.f32 %v1328_v2, 0.0 }
 0x84e   : > { %v1333_v7 = vpack.c.bf16 %v1332_v6, %v1331_v5 }
 0x850   : > { %2394 = vmatmul.mubr.bf16.vlgmr.msra.gmra.mrb[20].mxu1 %v1333_v7 }
 0x923   : > { %v1432_v8 = vpop.f32.mrb[20].mxu1 }
 0x924   : > { %v2395_v9 = vpop.f32.mrb[21].mxu1 }
 0x925   : > { %v1435_v10 = vpop.f32.mrb[22].mxu1 }
 0x926   : > { %v1439_v11 = vpack.c.bf16 %v1435_v10, %v1432_v8  ;;  %v2396_v12 = vpop.f32.mrb[23].mxu1 }
 0x928   : > { %2398 = vmatpush3.bf16.msra.mxu0 %v1439_v11 }
 0x929   : > { %2403 = vmatprep.subr.bf16.mxu0 %v2642_v3 }
 0x92b   : > { %2400 = vmatmul.mubr.msk.bf16.vlgmr.msra.gmra.mrb[12].mxu0 %vm815_vm2, %v2865_v45 }
 0x92c   : > { %2405 = vmatprep.mubr.msk.bf16.mxu0 %vm2643_vm1, %v2642_v3 }
 0x9fe   : > { %v1481_v14 = vpop.f32.mrb[12].mxu0 }
 0x9ff   : > { %v1482_v15 = vadd.f32 %v2112_v13, %v1481_v14  ;;  %v2401_v16 = vpop.f32.mrb[13].mxu0 }
 0xa00   : > { %v1484_v17 = vpop.f32.mrb[14].mxu0 }
 0xa01   : > { %1488 = vst [vmem:[%s3295_s20] sm:$0xff] %v1482_v15  ;;  %1490 = vst [vmem:[#allocation2] sm:$0xff] %v1482_v15  ;;  %v1485_v18 = vadd.f32 %v2112_v13, %v1484_v17  ;;  %v2402_v19 = vpop.f32.mrb[15].mxu0 }
 0xa03   : > { %1489 = vst [vmem:[%s3295_s20 + $0x8] sm:$0xff] %v1485_v18  ;;  %1491 = vst [vmem:[#allocation2 + $0x8] sm:$0xff] %v1485_v18  ;;  %v1508_v45 = vpack.c.bf16 %v1485_v18, %v1482_v15 }
 0xa05   : > { %2404 = vmatpush3.bf16.msra.mxu0 %v1508_v45 }
 0xa06   : > { %2409 = vmatprep.subr.bf16.mxu0 %v2642_v3 }
 0xa08   : > { %2406 = vmatmul.mubr.msk.bf16.vlgmr.msra.gmra.mrb[16].mxu0 %vm815_vm2, %v1509_v20 }
 0xa09   : > { %2410 = vmatpush3.bf16.msra.mxu0 %v2530_v21  ;;  %2425 = vmatprep.mubr.msk.bf16.mxu0 %vm2643_vm1, %v2642_v3 }
 0xa0a   : > { %2411 = vmatprep.subr.bf16.mxu0 %v2642_v3 }
 0xa0d   : > { %2412 = vmatpush3.bf16.msra.mxu0 %v2531_v22 }
 0xa0e   : > { %2413 = vmatprep.subr.bf16.mxu0 %v2642_v3 }
 0xa11   : > { %2414 = vmatpush3.bf16.msra.mxu0 %v2532_v23 }
 0xa12   : > { %2415 = vmatprep.subr.bf16.mxu0 %v2642_v3 }
 0xa15   : > { %2416 = vmatpush3.bf16.msra.mxu0 %v2533_v24 }
 0xa16   : > { %2417 = vmatprep.subr.bf16.mxu0 %v2642_v3 }
 0xa19   : > { %2418 = vmatpush3.bf16.msra.mxu0 %v2534_v25 }
 0xa1a   : > { %2419 = vmatprep.subr.bf16.mxu0 %v2642_v3 }
 0xa1d   : > { %2420 = vmatpush3.bf16.msra.mxu0 %v2535_v26 }
 0xa1e   : > { %2421 = vmatprep.subr.bf16.mxu0 %v2642_v3 }
 0xa21   : > { %2422 = vmatpush3.bf16.msra.mxu0 %v2536_v27 }
 0xa22   : > { %2423 = vmatprep.subr.bf16.mxu0 %v2642_v3 }
 0xa25   : > { %2424 = vmatpush3.bf16.msra.mxu0 %v2537_v28 }
 0xa28   : > { %2426 = vmatmul.mubr.bf16.vlgmr.msra.gmra.mrb[20].mxu0 %v1508_v45 }
 0xadb   : > { %v1547_v29 = vpop.f32.mrb[16].mxu0 }
 0xadc   : > { %1553 = vst [vmem:[%s3296_s21] sm:$0xff] %v1547_v29  ;;  %v2407_v30 = vpop.f32.mrb[17].mxu0 }
 0xadd   : > { %v1550_v31 = vpop.f32.mrb[18].mxu0 }
 0xade   : > { %v2408_v32 = vpop.f32.mrb[19].mxu0 }
 0xafb   : > { %v1659_v34 = vpop.f32.mrb[20].mxu0 }
 0xafc   : > { %v1660_v35 = vadd.f32 %v2115_v33, %v1659_v34  ;;  %v2427_v36 = vpop.f32.mrb[21].mxu0 }
 0xafd   : > { %v1662_v37 = vpop.f32.mrb[22].mxu0 }
 0xafe   : > { %1666 = vst [vmem:[%s3297_s22] sm:$0xff] %v1660_v35  ;;  %v1663_v3 = vadd.f32 %v2115_v33, %v1662_v37  ;;  %v2428_v38 = vpop.f32.mrb[23].mxu0 }
 0xb00   : > { %1667 = vst [vmem:[%s3297_s22 + $0x8] sm:$0xff] %v1663_v3 }
 0xb01 PF: > { %s1668_s26 = sld [smem:[#allocation4 + %s2776_s18]]  ;;  %v1687_v39 = vlaneseq }
 0xb02   : > { %s1669_s7 = sld [smem:[#allocation5 + %s2776_s18]] }
 0xb03   : > { %v3098_v40 = vshrl.u32 %v1687_v39, 7 }
 0xb05   : > { %v1689_v41 = vadd.s32 8, %v3098_v40  ;;  %v1690_v42 = vadd.s32 16, %v3098_v40  ;;  %v1691_v43 = vadd.s32 24, %v3098_v40  ;;  %v1696_v46 = vadd.s32 64, %v3098_v40 }
 0xb06   : > { %v1697_v47 = vadd.s32 72, %v3098_v40  ;;  %v1692_v56 = vadd.s32 32, %v3098_v40  ;;  %v1693_v57 = vadd.s32 40, %v3098_v40  ;;  %v1694_v2 = vadd.s32 48, %v3098_v40 }
 0xb07   : > { %s3107_s27 = scalar_lea.vmem [#allocation2], %s1668_s26  ;;  %v1695_v4 = vadd.s32 56, %v3098_v40  ;;  %v1698_v9 = vadd.s32 80, %v3098_v40  ;;  %v1699_v10 = vadd.s32 88, %v3098_v40  ;;  %v1700_v15 = vadd.s32 96, %v3098_v40 }
 0xb08   : > { %v3103_v44 = vstv %s1669_s7  ;;  %v1671_v48 = vld [vmem:[%s3107_s27] sm:$0xff]  ;;  %v1672_v49 = vld [vmem:[%s3107_s27 + $0x8] sm:$0xff]  ;;  %v1673_v50 = vld [vmem:[%s3107_s27 + $0x10] sm:$0xff]  ;;  %v1701_v16 = vadd.s32 104, %v3098_v40  ;;  %v1702_v20 = vadd.s32 112, %v3098_v40  ;;  %v1703_v21 = vadd.s32 120, %v3098_v40 }
 0xb09   : > { %vm1705_vm3 = vcmp.lt.s32.totalorder %v3098_v40, %v3103_v44  ;;  %vm1706_vm4 = vcmp.lt.s32.totalorder %v1689_v41, %v3103_v44  ;;  %vm1707_vm5 = vcmp.lt.s32.totalorder %v1690_v42, %v3103_v44  ;;  %vm1708_vm6 = vcmp.lt.s32.totalorder %v1691_v43, %v3103_v44  ;;  %v1674_v53 = vld [vmem:[%s3107_s27 + $0x18] sm:$0xff]  ;;  %v1679_v58 = vld [vmem:[%s3107_s27 + $0x40] sm:$0xff]  ;;  %v1680_v59 = vld [vmem:[%s3107_s27 + $0x48] sm:$0xff] }
 0xb0a   : > { %vm3117_vm7 = vmpackc.low %vm1706_vm4, %vm1705_vm3  ;;  %v2125_v52 = vpack.c.bf16 %v1672_v49, %v1671_v48  ;;  %v3126_v55 = vpack.c.bf16 %v1674_v53, %v1673_v50  ;;  %vm1713_vm9 = vcmp.lt.s32.totalorder %v1696_v46, %v3103_v44  ;;  %vm1714_vm10 = vcmp.lt.s32.totalorder %v1697_v47, %v3103_v44  ;;  %v1675_v61 = vld [vmem:[%s3107_s27 + $0x20] sm:$0xff]  ;;  %v1676_v62 = vld [vmem:[%s3107_s27 + $0x28] sm:$0xff] }
 0xb0b   : > { %vm3122_vm8 = vmpackc.low %vm1708_vm6, %vm1707_vm5  ;;  %v2137_v60 = vpack.c.bf16 %v1680_v59, %v1679_v58  ;;  %vm1709_vm12 = vcmp.lt.s32.totalorder %v1692_v56, %v3103_v44  ;;  %vm1710_vm13 = vcmp.lt.s32.totalorder %v1693_v57, %v3103_v44  ;;  %v2131_v0 = vpack.c.bf16 %v1676_v62, %v1675_v61  ;;  %v1677_v5 = vld [vmem:[%s3107_s27 + $0x30] sm:$0xff]  ;;  %v1678_v6 = vld [vmem:[%s3107_s27 + $0x38] sm:$0xff] }
 0xb0c   : > { %2429 = vmatprep.subr.msk.bf16.mxu0 %vm3117_vm7, %v2125_v52  ;;  %2461 = vmatprep.subr.msk.bf16.mxu1 %vm3117_vm7, %v2125_v52  ;;  %vm3150_vm11 = vmpackc.low %vm1714_vm10, %vm1713_vm9  ;;  %vm1711_vm15 = vcmp.lt.s32.totalorder %v1694_v2, %v3103_v44  ;;  %vm1712_vm0 = vcmp.lt.s32.totalorder %v1695_v4, %v3103_v44  ;;  %v2134_v7 = vpack.c.bf16 %v1678_v6, %v1677_v5  ;;  %v1681_v11 = vld [vmem:[%s3107_s27 + $0x50] sm:$0xff]  ;;  %v1682_v12 = vld [vmem:[%s3107_s27 + $0x58] sm:$0xff] }
 0xb0d   : > { %2430 = vmatpush3.bf16.xpose.msk.msra.mxu0 %vm3117_vm7, %v2125_v52  ;;  %2469 = vmatpush3.bf16.xpose.msk.msra.mxu1 %vm3117_vm7, %v2125_v52  ;;  %vm3160_vm14 = vmpackc.low %vm1710_vm13, %vm1709_vm12  ;;  %vm1715_vm2 = vcmp.lt.s32.totalorder %v1698_v9, %v3103_v44  ;;  %vm1716_vm3 = vcmp.lt.s32.totalorder %v1699_v10, %v3103_v44  ;;  %v2140_v13 = vpack.c.bf16 %v1682_v12, %v1681_v11  ;;  %v1683_v17 = vld [vmem:[%s3107_s27 + $0x60] sm:$0xff]  ;;  %v1684_v18 = vld [vmem:[%s3107_s27 + $0x68] sm:$0xff] }
 0xb0e   : > { %2431 = vmatprep.subr.msk.bf16.mxu0 %vm3122_vm8, %v3126_v55  ;;  %2462 = vmatprep.subr.msk.bf16.mxu1 %vm3122_vm8, %v3126_v55  ;;  %vm3180_vm1 = vmpackc.low %vm1712_vm0, %vm1711_vm15  ;;  %vm1717_vm5 = vcmp.lt.s32.totalorder %v1700_v15, %v3103_v44  ;;  %vm1718_vm6 = vcmp.lt.s32.totalorder %v1701_v16, %v3103_v44  ;;  %v2143_v19 = vpack.c.bf16 %v1684_v18, %v1683_v17  ;;  %v1685_v22 = vld [vmem:[%s3107_s27 + $0x70] sm:$0xff]  ;;  %v1686_v23 = vld [vmem:[%s3107_s27 + $0x78] sm:$0xff] }
 0xb0f   : > { %2445 = vmatprep.mubr.msk.bf16.mxu0 %vm3117_vm7, %v2125_v52  ;;  %2453 = vmatprep.mubr.msk.bf16.mxu1 %vm3150_vm11, %v2137_v60  ;;  %vm3206_vm4 = vmpackc.low %vm1716_vm3, %vm1715_vm2  ;;  %vm1719_vm9 = vcmp.lt.s32.totalorder %v1702_v20, %v3103_v44  ;;  %vm1720_vm10 = vcmp.lt.s32.totalorder %v1703_v21, %v3103_v44  ;;  %v2146_v24 = vpack.c.bf16 %v1686_v23, %v1685_v22 }
 0xb10   : > { %vm3224_vm7 = vmpackc.low %vm1718_vm6, %vm1717_vm5 }
 0xb15   : > { %2432 = vmatpush3.bf16.xpose.msk.msra.mxu0 %vm3122_vm8, %v3126_v55  ;;  %2470 = vmatpush3.bf16.xpose.msk.msra.mxu1 %vm3122_vm8, %v3126_v55 }
 0xb16   : > { %2433 = vmatprep.subr.msk.bf16.mxu0 %vm3160_vm14, %v2131_v0  ;;  %2463 = vmatprep.subr.msk.bf16.mxu1 %vm3160_vm14, %v2131_v0 }
 0xb1d   : > { %2434 = vmatpush3.bf16.xpose.msk.msra.mxu0 %vm3160_vm14, %v2131_v0  ;;  %2471 = vmatpush3.bf16.xpose.msk.msra.mxu1 %vm3160_vm14, %v2131_v0 }
 0xb1e   : > { %2435 = vmatprep.subr.msk.bf16.mxu0 %vm3180_vm1, %v2134_v7  ;;  %2464 = vmatprep.subr.msk.bf16.mxu1 %vm3180_vm1, %v2134_v7 }
 0xb25   : > { %2436 = vmatpush3.bf16.xpose.msk.msra.mxu0 %vm3180_vm1, %v2134_v7  ;;  %2472 = vmatpush3.bf16.xpose.msk.msra.mxu1 %vm3180_vm1, %v2134_v7 }
 0xb26   : > { %2437 = vmatprep.subr.msk.bf16.mxu0 %vm3150_vm11, %v2137_v60  ;;  %2465 = vmatprep.subr.msk.bf16.mxu1 %vm3150_vm11, %v2137_v60 }
 0xb2d   : > { %2438 = vmatpush3.bf16.xpose.msk.msra.mxu0 %vm3150_vm11, %v2137_v60  ;;  %2473 = vmatpush3.bf16.xpose.msk.msra.mxu1 %vm3150_vm11, %v2137_v60  ;;  %vm2145_vm11 = vmpackc.low %vm1720_vm10, %vm1719_vm9 }
 0xb2e   : > { %2439 = vmatprep.subr.msk.bf16.mxu0 %vm3206_vm4, %v2140_v13  ;;  %2466 = vmatprep.subr.msk.bf16.mxu1 %vm3206_vm4, %v2140_v13 }
 0xb35   : > { %2440 = vmatpush3.bf16.xpose.msk.msra.mxu0 %vm3206_vm4, %v2140_v13  ;;  %2474 = vmatpush3.bf16.xpose.msk.msra.mxu1 %vm3206_vm4, %v2140_v13 }
 0xb36   : > { %2441 = vmatprep.subr.msk.bf16.mxu0 %vm3224_vm7, %v2143_v19  ;;  %2467 = vmatprep.subr.msk.bf16.mxu1 %vm3224_vm7, %v2143_v19 }
 0xb3d   : > { %2442 = vmatpush3.bf16.xpose.msk.msra.mxu0 %vm3224_vm7, %v2143_v19  ;;  %2475 = vmatpush3.bf16.xpose.msk.msra.mxu1 %vm3224_vm7, %v2143_v19 }
 0xb3e   : > { %2443 = vmatprep.subr.msk.bf16.mxu0 %vm2145_vm11, %v2146_v24  ;;  %2468 = vmatprep.subr.msk.bf16.mxu1 %vm2145_vm11, %v2146_v24 }
 0xb45   : > { %2444 = vmatpush3.bf16.xpose.msk.msra.mxu0 %vm2145_vm11, %v2146_v24  ;;  %2476 = vmatpush3.bf16.xpose.msk.msra.mxu1 %vm2145_vm11, %v2146_v24 }
 0xb4c   : > { %2446 = vmatmul.mubr.msk.bf16.vlgmr.msra.gmra.mrb[0].mxu0 %vm3122_vm8, %v3126_v55  ;;  %2454 = vmatmul.mubr.msk.bf16.vlgmr.msra.gmra.mrb[0].mxu1 %vm3206_vm4, %v2140_v13 }
 0xb4d   : > { %2449 = vmatprep.mubr.msk.bf16.mxu0 %vm3160_vm14, %v2131_v0  ;;  %2457 = vmatprep.mubr.msk.bf16.mxu1 %vm3224_vm7, %v2143_v19 }
 0xb54   : > { %2450 = vmatmul.mubr.msk.bf16.gmra.mrb[4].mxu0 %vm3180_vm1, %v2134_v7  ;;  %2458 = vmatmul.mubr.msk.bf16.gmra.mrb[4].mxu1 %vm2145_vm11, %v2146_v24 }
 0xc1f   : > { %v2447_v25 = vpop.f32.mrb[0].mxu0  ;;  %v2455_v26 = vpop.f32.mrb[0].mxu1 }
 0xc20   : > { %v2174_v27 = vmul.f32 -1.442695, %v2447_v25  ;;  %v2182_v28 = vmul.f32 -1.442695, %v2455_v26  ;;  %v1811_v29 = vpop.f32.mrb[1].mxu0  ;;  %v1843_v30 = vpop.f32.mrb[1].mxu1 }
 0xc21   : > { %v2172_v31 = vmul.f32 -1.442695, %v1811_v29  ;;  %v2180_v32 = vmul.f32 -1.442695, %v1843_v30  ;;  %v2448_v33 = vpop.f32.mrb[2].mxu0  ;;  %v2456_v34 = vpop.f32.mrb[2].mxu1 }
 0xc22   : > { %2542 = vpow2.f32 %v2174_v27  ;;  %v2175_v35 = vmul.f32 -1.442695, %v2448_v33  ;;  %v1814_v36 = vpop.f32.mrb[3].mxu0  ;;  %v1846_v37 = vpop.f32.mrb[3].mxu1  ;;  %v2183_v3 = vmul.f32 -1.442695, %v2456_v34 }
 0xc23   : > { %2544 = vpow2.f32 %v2182_v28  ;;  %v2173_v38 = vmul.f32 -1.442695, %v1814_v36  ;;  %v2181_v39 = vmul.f32 -1.442695, %v1846_v37 }
 0xc24   : > { %2546 = vpow2.f32 %v2172_v31 }
 0xc25   : > { %2548 = vpow2.f32 %v2180_v32 }
 0xc26   : > { %2550 = vpow2.f32 %v2175_v35 }
 0xc27   : > { %2552 = vpow2.f32 %v2183_v3  ;;  %v2451_v40 = vpop.f32.mrb[4].mxu0  ;;  %v2459_v41 = vpop.f32.mrb[4].mxu1 }
 0xc28   : > { %2554 = vpow2.f32 %v2173_v38  ;;  %v2178_v42 = vmul.f32 -1.442695, %v2451_v40  ;;  %v2186_v43 = vmul.f32 -1.442695, %v2459_v41  ;;  %v1827_v44 = vpop.f32.mrb[5].mxu0  ;;  %v1859_v46 = vpop.f32.mrb[5].mxu1 }
 0xc29   : > { %2556 = vpow2.f32 %v2181_v39  ;;  %v2176_v47 = vmul.f32 -1.442695, %v1827_v44  ;;  %v2184_v48 = vmul.f32 -1.442695, %v1859_v46  ;;  %v2452_v49 = vpop.f32.mrb[6].mxu0  ;;  %v2460_v50 = vpop.f32.mrb[6].mxu1 }
 0xc2a   : > { %2558 = vpow2.f32 %v2178_v42  ;;  %v2179_v51 = vmul.f32 -1.442695, %v2452_v49  ;;  %v1830_v52 = vpop.f32.mrb[7].mxu0  ;;  %v1862_v53 = vpop.f32.mrb[7].mxu1  ;;  %v2187_v16 = vmul.f32 -1.442695, %v2460_v50 }
 0xc2b   : > { %2560 = vpow2.f32 %v2186_v43  ;;  %v2177_v19 = vmul.f32 -1.442695, %v1830_v52  ;;  %v2185_v20 = vmul.f32 -1.442695, %v1862_v53 }
 0xc2c   : > { %v2543_v54 = vpop.eup %2542  ;;  %2562 = vpow2.f32 %v2176_v47 }
 0xc2d   : > { %v2545_v55 = vpop.eup %2544  ;;  %v1924_v56 = vadd.f32 1.0, %v2543_v54  ;;  %2564 = vpow2.f32 %v2184_v48 }
 0xc2e   : > { %v2547_v57 = vpop.eup %2546  ;;  %v1932_v58 = vadd.f32 1.0, %v2545_v55  ;;  %2566 = vpow2.f32 %v2179_v51 }
 0xc2f   : > { %v2549_v59 = vpop.eup %2548  ;;  %2568 = vrcp.f32 %v1924_v56  ;;  %v1922_v60 = vadd.f32 1.0, %v2547_v57 }
 0xc30   : > { %v2551_v61 = vpop.eup %2550  ;;  %2570 = vrcp.f32 %v1932_v58  ;;  %v1930_v62 = vadd.f32 1.0, %v2549_v59 }
 0xc31   : > { %v2553_v63 = vpop.eup %2552  ;;  %2572 = vrcp.f32 %v1922_v60  ;;  %v1925_v0 = vadd.f32 1.0, %v2551_v61 }
 0xc32   : > { %v2555_v1 = vpop.eup %2554  ;;  %2574 = vrcp.f32 %v1930_v62  ;;  %v1933_v2 = vadd.f32 1.0, %v2553_v63 }
 0xc33   : > { %v2557_v4 = vpop.eup %2556  ;;  %2576 = vrcp.f32 %v1925_v0  ;;  %v1923_v5 = vadd.f32 1.0, %v2555_v1 }
 0xc34   : > { %v2559_v6 = vpop.eup %2558  ;;  %2578 = vrcp.f32 %v1933_v2  ;;  %v1931_v7 = vadd.f32 1.0, %v2557_v4 }
 0xc35   : > { %v2561_v8 = vpop.eup %2560  ;;  %2580 = vrcp.f32 %v1923_v5  ;;  %v1928_v9 = vadd.f32 1.0, %v2559_v6 }
 0xc36   : > { %v2563_v10 = vpop.eup %2562  ;;  %2582 = vrcp.f32 %v1931_v7  ;;  %v1936_v11 = vadd.f32 1.0, %v2561_v8 }
 0xc37   : > { %v2565_v12 = vpop.eup %2564  ;;  %2584 = vrcp.f32 %v1928_v9  ;;  %v1926_v13 = vadd.f32 1.0, %v2563_v10 }
 0xc38   : > { %v2567_v14 = vpop.eup %2566  ;;  %2586 = vrcp.f32 %v1936_v11  ;;  %v1934_v15 = vadd.f32 1.0, %v2565_v12 }
 0xc39   : > { %v2569_v17 = vpop.eup %2568  ;;  %2588 = vrcp.f32 %v1926_v13  ;;  %v1929_v18 = vadd.f32 1.0, %v2567_v14 }
 0xc3a   : > { %v2571_v45 = vpop.eup %2570  ;;  %1972 = vst [vmem:[%s2785_s0 + $0x10] sm:$0xff] %v2569_v17  ;;  %2590 = vrcp.f32 %v1934_v15 }
 0xc3b   : > { %v2573_v21 = vpop.eup %2572  ;;  %1980 = vst [vmem:[%s2785_s0 + $0x50] sm:$0xff] %v2571_v45  ;;  %2592 = vrcp.f32 %v1929_v18 }
 0xc3c   : > { %v2575_v22 = vpop.eup %2574  ;;  %1970 = vst [vmem:[%s2785_s0] sm:$0xff] %v2573_v21  ;;  %2594 = vpow2.f32 %v2187_v16 }
 0xc3d   : > { %v2577_v23 = vpop.eup %2576  ;;  %1978 = vst [vmem:[%s2785_s0 + $0x40] sm:$0xff] %v2575_v22  ;;  %2596 = vpow2.f32 %v2177_v19 }
 0xc3e   : > { %v2579_v24 = vpop.eup %2578  ;;  %1973 = vst [vmem:[%s2785_s0 + $0x18] sm:$0xff] %v2577_v23  ;;  %2598 = vpow2.f32 %v2185_v20 }
 0xc3f   : > { %v2581_v25 = vpop.eup %2580  ;;  %1981 = vst [vmem:[%s2785_s0 + $0x58] sm:$0xff] %v2579_v24 }
 0xc40   : > { %v2583_v26 = vpop.eup %2582  ;;  %1971 = vst [vmem:[%s2785_s0 + $0x8] sm:$0xff] %v2581_v25 }
 0xc41   : > { %v2585_v27 = vpop.eup %2584  ;;  %1979 = vst [vmem:[%s2785_s0 + $0x48] sm:$0xff] %v2583_v26 }
 0xc42   : > { %v2587_v28 = vpop.eup %2586  ;;  %1976 = vst [vmem:[%s2785_s0 + $0x30] sm:$0xff] %v2585_v27 }
 0xc43   : > { %v2589_v29 = vpop.eup %2588  ;;  %1984 = vst [vmem:[%s2785_s0 + $0x70] sm:$0xff] %v2587_v28 }
 0xc44   : > { %v2591_v30 = vpop.eup %2590  ;;  %1974 = vst [vmem:[%s2785_s0 + $0x20] sm:$0xff] %v2589_v29 }
 0xc45   : > { %v2593_v31 = vpop.eup %2592  ;;  %1982 = vst [vmem:[%s2785_s0 + $0x60] sm:$0xff] %v2591_v30 }
 0xc46   : > { %v2595_v32 = vpop.eup %2594  ;;  %1977 = vst [vmem:[%s2785_s0 + $0x38] sm:$0xff] %v2593_v31 }
 0xc47   : > { %v2597_v33 = vpop.eup %2596  ;;  %v1937_v34 = vadd.f32 1.0, %v2595_v32 }
 0xc48   : > { %v2599_v35 = vpop.eup %2598  ;;  %v1927_v36 = vadd.f32 1.0, %v2597_v33 }
 0xc49   : > { %2600 = vrcp.f32 %v1937_v34  ;;  %v1935_v37 = vadd.f32 1.0, %v2599_v35 }
 0xc4a   : > { %2602 = vrcp.f32 %v1927_v36 }
 0xc4b   : > { %2604 = vrcp.f32 %v1935_v37 }
 0xc53   : > { %v2601_v3 = vpop.eup %2600 }
 0xc54   : > { %v2603_v38 = vpop.eup %2602  ;;  %1985 = vst [vmem:[%s2785_s0 + $0x78] sm:$0xff] %v2601_v3 }
 0xc55   : > { %v2605_v39 = vpop.eup %2604  ;;  %1975 = vst [vmem:[%s2785_s0 + $0x28] sm:$0xff] %v2603_v38 }
 0xc56   : > { %1983 = vst [vmem:[%s2785_s0 + $0x68] sm:$0xff] %v2605_v39 }
 0xc57 PF: > { %s44_s1 = sadd.s32 1, %s2638_s1  }
 0xc58   : > { %p41_p1 = scmp.ge.s32.totalorder %s44_s1, 4  }
 0xc5a   :  { %43 = sbr.rel (!%p41_p1) target bundleno = 34 (0x22), region = 152 }

</bundles_post_ra>
